<compile_context>
chip_gen: v5e
topology: v5e:2x2
jax: 0.10.0
libtpu: 0.0.40
codegen_flags: <defaults>
</compile_context>

<pallas_src>
import jax
import jax.numpy as jnp
from jax import lax
from jax.experimental import pallas as pl
from jax.experimental.pallas import tpu as pltpu


_FUSED_N_MAX = 8192      # above this many points, switch to the two-pass path
_TILE_N = 2048           # lane tile (multiple of 128) for the two-pass path
_PACK_B_N_MAX = 1024     # pack several batch elements per step when N <= this


def _round_up(x, m):
    return -(-x // m) * m


def _relu(v):
    return jnp.maximum(v, 0.0)


def _dot(w_bf16, act):
    """MXU matmul: bf16 operands, f32 accumulation."""
    return jnp.dot(w_bf16, act.astype(jnp.bfloat16),
                   preferred_element_type=jnp.float32)


# ---------------------------------------------------------------------------
# In-kernel compute helpers (closed over the packed-slab layout via w_of/b_of)
#
# Layer order inside the packed slabs (BN folded into the conv/linear):
#   0 feat.conv1(+bn1)    1 feat.conv4(+bn12)   2 feat.conv2(+bn2)
#   3 feat.conv3(+bn3)    4 feat.fc1(+bn4)      5 feat.fc2(+bn5)
#   6 seg.conv1(+bn1) global half (carries bias bs1)
#   7 seg.conv1(+bn1) pointfeat half (zero bias)
#   8 seg.conv2(+bn2)     9 seg.conv3
# ---------------------------------------------------------------------------
def _layer_fns(dims, offs, w_ref, b_ref):
    def w_of(i):
        off, (cout, cin) = offs[i], dims[i]
        return w_ref[off:off + cout, 0:cin]          # bf16 [cout, cin]

    def b_of(i):
        off, (cout, _) = offs[i], dims[i]
        return b_ref[off:off + cout, 0:1]            # f32  [cout, 1]

    return w_of, b_of


def _pointfeat(x, w_of, b_of):
    """conv1(+bn1) -> conv4(+bn12).  x: [n_feat, N] f32 -> [2sf, N] f32."""
    # conv1: K = n_feat is tiny -> unrolled VPU outer-product accumulate
    # (re-evaluated per review: the trunk is MXU-bound after the global-path
    # collapse, the VPU has slack, and this keeps the raw coordinates in f32).
    w1 = w_of(0).astype(jnp.float32)
    h = b_of(0) + w1[:, 0:1] * x[0:1, :]
    for k in range(1, w1.shape[1]):
        h = h + w1[:, k:k + 1] * x[k:k + 1, :]
    h = _relu(h)                                     # [sf,  N]
    return _relu(_dot(w_of(1), h) + b_of(1))         # [2sf, N]


def _deep(pf, w_of, b_of):
    """conv2(+bn2) -> conv3(+bn3).  [2sf, N] -> [8sf, N]."""
    h = _relu(_dot(w_of(2), pf) + b_of(2))           # [4sf, N]
    return _relu(_dot(w_of(3), h) + b_of(3))         # [8sf, N]


def _global_column(gmax_col, w_of, b_of):
    """fc1 -> fc2 -> global half of seg.conv1, all on a single [*, 1] column.

    Returns the [2sf, 1] per-channel bias column (includes seg bn1 bias)."""
    g = _relu(_dot(w_of(4), gmax_col) + b_of(4))     # [4sf, 1]
    g = _relu(_dot(w_of(5), g) + b_of(5))            # [2sf, 1]
    return _dot(w_of(6), g) + b_of(6)                # [2sf, 1]


def _seg_head(pf, gcol, w_of, b_of):
    """seg.conv1 (pointfeat half + global bias column) -> conv2 -> conv3."""
    s = _relu(_dot(w_of(7), pf) + gcol)              # [2sf, N]
    s = _relu(_dot(w_of(8), s) + b_of(8))            # [sf,  N]
    s = _dot(w_of(9), s) + b_of(9)                   # [1,   N]
    return jax.nn.sigmoid(s)                         # lane-dense store


# ---------------------------------------------------------------------------
# Kernels
# ---------------------------------------------------------------------------
def _make_fused_kernel(dims, offs, bt):
    """Single-pass kernel: whole point cloud resident, bt batch elems/step."""
    def kernel(x_ref, w_ref, b_ref, out_ref):
        w_of, b_of = _layer_fns(dims, offs, w_ref, b_ref)
        for bi in range(bt):                         # unrolled batch pack
            x = x_ref[bi]                            # [n_feat, N] f32
            pf = _pointfeat(x, w_of, b_of)
            h = _deep(pf, w_of, b_of)
            gmax = jnp.max(h, axis=1, keepdims=True)     # [8sf, 1] lane reduce
            gcol = _global_column(gmax, w_of, b_of)
            out_ref[bi] = _seg_head(pf, gcol, w_of, b_of)
    return kernel


def _make_pass1_kernel(dims, offs, n_valid, tn):
    """Two-pass path, pass 1: running channel max of conv3 features over N."""
    def kernel(x_ref, w_ref, b_ref, gmax_ref):
        w_of, b_of = _layer_fns(dims, offs, w_ref, b_ref)
        n_idx = pl.program_id(1)

        @pl.when(n_idx == 0)
        def _():
            # ReLU outputs are >= 0, so 0 is the identity for this running max.
            gmax_ref[0] = jnp.zeros(gmax_ref.shape[1:], gmax_ref.dtype)

        h = _deep(_pointfeat(x_ref[0], w_of, b_of), w_of, b_of)   # [8sf, tn]
        # Mask lanes past the true N: the input is zero-padded and the bias
        # chains would otherwise inflate the global max.
        lane = lax.broadcasted_iota(jnp.int32, h.shape, 1)
        h = jnp.where(lane < n_valid - n_idx * tn, h, 0.0)
        gmax_ref[0] = jnp.maximum(gmax_ref[0],
                                  jnp.max(h, axis=1, keepdims=True))
    return kernel


def _make_pass2_kernel(dims, offs):
    """Two-pass path, pass 2: recompute cheap pointfeat per tile + seg head."""
    def kernel(gmax_ref, x_ref, w_ref, b_ref, out_ref):
        w_of, b_of = _layer_fns(dims, offs, w_ref, b_ref)
        pf = _pointfeat(x_ref[0], w_of, b_of)
        gcol = _global_column(gmax_ref[0], w_of, b_of)
        out_ref[0] = _seg_head(pf, gcol, w_of, b_of)
    return kernel


# ---------------------------------------------------------------------------
# Parameters (deterministic init; eval-mode BN folded into conv/linear)
# ---------------------------------------------------------------------------
def _conv_bn(key, cin, cout, with_bn=True, eps=1e-5):
    """Returns W of shape [cout, cin] and bias of shape [cout]."""
    ks = jax.random.split(key, 6)
    w = jax.random.normal(ks[0], (cout, cin), jnp.float32) * 0.2
    b = jax.random.normal(ks[1], (cout,), jnp.float32) * 0.1
    if with_bn:
        gamma = jax.random.uniform(ks[2], (cout,), jnp.float32, 0.5, 1.5)
        beta = jax.random.normal(ks[3], (cout,), jnp.float32) * 0.1
        mean = jax.random.normal(ks[4], (cout,), jnp.float32) * 0.1
        var = jax.random.uniform(ks[5], (cout,), jnp.float32, 0.5, 1.5)
        scale = gamma / jnp.sqrt(var + eps)
        w = w * scale[:, None]
        b = scale * (b - mean) + beta
    return w, b


def init_params(key, scale_factor=2, n_feat=3):
    sf = 8 * scale_factor
    ks = jax.random.split(key, 9)
    return (
        _conv_bn(ks[0], n_feat, sf),        # feat.conv1 (+bn1)
        _conv_bn(ks[1], sf, 2 * sf),        # feat.conv4 (+bn12)
        _conv_bn(ks[2], 2 * sf, 4 * sf),    # feat.conv2 (+bn2)
        _conv_bn(ks[3], 4 * sf, 8 * sf),    # feat.conv3 (+bn3)
        _conv_bn(ks[4], 8 * sf, 4 * sf),    # feat.fc1  (+bn4)
        _conv_bn(ks[5], 4 * sf, 2 * sf),    # feat.fc2  (+bn5)
        _conv_bn(ks[6], 4 * sf, 2 * sf),    # seg.conv1 (+bn1) on cat(4sf)
        _conv_bn(ks[7], 2 * sf, sf),        # seg.conv2 (+bn2)
        _conv_bn(ks[8], sf, 1, with_bn=False),  # seg.conv3
    )


def _pack_params(params):
    """Pack all weights/biases into two pre-padded slabs (2 prologue DMAs).

    Weight slab is stored in bfloat16 (MXU operand dtype); bias slab stays
    f32.  seg.conv1 is split into its global / pointfeat column halves."""
    (w1, b1), (w4, b4), (w2, b2), (w3, b3), (wf1, bf1), (wf2, bf2), \
        (ws1, bs1), (ws2, bs2), (ws3, bs3) = params
    sf = int(w1.shape[0])
    ws1a = ws1[:, :2 * sf]                 # acts on the global-feature column
    ws1b = ws1[:, 2 * sf:]                 # acts on pointfeat
    zero_b = jnp.zeros((ws1b.shape[0],), jnp.float32)
    layers = [(w1, b1), (w4, b4), (w2, b2), (w3, b3), (wf1, bf1), (wf2, bf2),
              (ws1a, bs1), (ws1b, zero_b), (ws2, bs2), (ws3, bs3)]

    dims = tuple((int(w.shape[0]), int(w.shape[1])) for w, _ in layers)
    offs, r = [], 0
    for cout, _ in dims:
        offs.append(r)
        r += _round_up(cout, 16)           # bf16 packs 16 rows per vreg tile
    n_rows = _round_up(r, 16)
    n_cols = _round_up(max(cin for _, cin in dims), 128)

    wslab = jnp.zeros((n_rows, n_cols), jnp.float32)
    bslab = jnp.zeros((n_rows, 1), jnp.float32)
    for (w, b), (cout, cin), off in zip(layers, dims, offs):
        wslab = wslab.at[off:off + cout, :cin].set(w.astype(jnp.float32))
        bslab = bslab.at[off:off + cout, 0].set(b.astype(jnp.float32))
    return wslab.astype(jnp.bfloat16), bslab, dims, tuple(offs)


# ---------------------------------------------------------------------------
# Wrappers
# ---------------------------------------------------------------------------
def _vmem_limit(est_bytes):
    return int(min(64 * 2 ** 20, max(32 * 2 ** 20, 2 * est_bytes)))


def _cost(dims, n_batch, n_pts, layer_ids, n_sigmoid, slab_bytes):
    macs = sum(dims[i][0] * dims[i][1] for i in layer_ids)
    return pl.CostEstimate(
        flops=2 * n_batch * n_pts * macs,
        transcendentals=int(n_sigmoid),
        bytes_accessed=n_batch * n_pts * (dims[0][1] + 1) * 4 + slab_bytes)


def _forward_fused(x, wslab, bslab, dims, offs):
    B, C, N = x.shape
    sf = dims[0][0]
    slab_bytes = wslab.size * 2 + bslab.size * 4

    # Small-N: pack several batch elements per grid step so the ~0.35 us fixed
    # per-step cost does not dominate the per-point compute.
    bt = 1
    if N <= _PACK_B_N_MAX:
        for cand in range(min(B, 8), 0, -1):
            if B % cand == 0:
                bt = cand
                break

    est = 2 * bt * (C + 1) * N * 4 + 2 * slab_bytes + bt * 100 * sf * N
    out = pl.pallas_call(
        _make_fused_kernel(dims, offs, bt),
        grid=(B // bt,),
        in_specs=[
            pl.BlockSpec((bt, C, N), lambda b: (b, 0, 0)),   # points on lanes
            pl.BlockSpec(wslab.shape, lambda b: (0, 0)),     # weight slab
            pl.BlockSpec(bslab.shape, lambda b: (0, 0)),     # bias slab
        ],
        out_specs=pl.BlockSpec((bt, 1, N), lambda b: (b, 0, 0)),
        out_shape=jax.ShapeDtypeStruct((B, 1, N), jnp.float32),
        compiler_params=pltpu.CompilerParams(
            dimension_semantics=("parallel",),               # batch indep.
            vmem_limit_bytes=_vmem_limit(est)),
        cost_estimate=_cost(dims, B, N, (0, 1, 2, 3, 7, 8, 9), B * N,
                            slab_bytes),
    )(x, wslab, bslab)
    return out[:, 0, :]


def _forward_tiled(x, wslab, bslab, dims, offs, tile_n):
    B, C, N = x.shape
    sf = dims[0][0]
    slab_bytes = wslab.size * 2 + bslab.size * 4
    tn = max(128, _round_up(int(tile_n), 128))
    n_pad = _round_up(N, tn)
    if n_pad != N:
        x = jnp.pad(x, ((0, 0), (0, 0), (0, n_pad - N)))
    n_tiles = n_pad // tn

    # Pass 1: running max over N of the conv3 features -> [B, 8sf, 1].
    est1 = 2 * C * tn * 4 + 2 * slab_bytes + 80 * sf * tn
    gmax = pl.pallas_call(
        _make_pass1_kernel(dims, offs, N, tn),
        grid=(B, n_tiles),                                   # reduction last
        in_specs=[
            pl.BlockSpec((1, C, tn), lambda b, n: (b, 0, n)),
            pl.BlockSpec(wslab.shape, lambda b, n: (0, 0)),
            pl.BlockSpec(bslab.shape, lambda b, n: (0, 0)),
        ],
        out_specs=pl.BlockSpec((1, 8 * sf, 1), lambda b, n: (b, 0, 0)),
        out_shape=jax.ShapeDtypeStruct((B, 8 * sf, 1), jnp.float32),
        compiler_params=pltpu.CompilerParams(
            dimension_semantics=("parallel", "arbitrary"),
            vmem_limit_bytes=_vmem_limit(est1)),
        cost_estimate=_cost(dims, B, n_pad, (0, 1, 2, 3), 0, slab_bytes),
    )(x, wslab, bslab)

    # Pass 2: recompute the cheap pointfeat per tile + seg head.  The N axis is
    # fully parallel (on v7x it is sharded across both TensorCores).
    est2 = 2 * (C + 1) * tn * 4 + 2 * slab_bytes + 48 * sf * tn
    out = pl.pallas_call(
        _make_pass2_kernel(dims, offs),
        grid=(B, n_tiles),
        in_specs=[
            pl.BlockSpec((1, 8 * sf, 1), lambda b, n: (b, 0, 0)),
            pl.BlockSpec((1, C, tn), lambda b, n: (b, 0, n)),
            pl.BlockSpec(wslab.shape, lambda b, n: (0, 0)),
            pl.BlockSpec(bslab.shape, lambda b, n: (0, 0)),
        ],
        out_specs=pl.BlockSpec((1, 1, tn), lambda b, n: (b, 0, n)),
        out_shape=jax.ShapeDtypeStruct((B, 1, n_pad), jnp.float32),
        compiler_params=pltpu.CompilerParams(
            dimension_semantics=("parallel", "parallel"),
            vmem_limit_bytes=_vmem_limit(est2)),
        cost_estimate=_cost(dims, B, n_pad, (0, 1, 7, 8, 9), B * n_pad,
                            slab_bytes),
    )(gmax, x, wslab, bslab)
    return out[:, 0, :N]


def pointnet_seg_forward(x_ncw, params, *, tiled=None, tile_n=_TILE_N):
    """x_ncw: [B, n_feat, N] (PyTorch NCW). Returns sigmoid scores [B, N]."""
    x = x_ncw.astype(jnp.float32)
    _, _, N = x.shape
    wslab, bslab, dims, offs = _pack_params(params)
    if tiled is None:
        tiled = N > _FUSED_N_MAX
    if tiled:
        return _forward_tiled(x, wslab, bslab, dims, offs, tile_n)
    return _forward_fused(x, wslab, bslab, dims, offs)


# ---------------------------------------------------------------------------
# Pure-JAX reference (same BN-folded, eval-mode forward pass)
# ---------------------------------------------------------------------------
def ref_forward(x_ncw, params, matmul_dtype=jnp.float32):
    """matmul_dtype=bfloat16 mirrors the kernel's MXU input precision (bf16
    operands, f32 accumulation); float32 is the full-precision baseline."""
    (w1, b1), (w4, b4), (w2, b2), (w3, b3), (wf1, bf1), (wf2, bf2), \
        (ws1, bs1), (ws2, bs2), (ws3, bs3) = params
    x = x_ncw.astype(jnp.float32)
    relu = jax.nn.relu
    hp = jax.lax.Precision.HIGHEST
    cast = lambda a: a.astype(matmul_dtype)
    conv = lambda w, a: jnp.einsum('oc,bcn->bon', cast(w), cast(a),
                                   preferred_element_type=jnp.float32,
                                   precision=hp)
    bias = lambda b: b[None, :, None]

    # conv1: the kernel runs it on the VPU with f32 activations and
    # (possibly) bf16-rounded weights -> mirror that here.
    h = relu(jnp.einsum('oc,bcn->bon', cast(w1).astype(jnp.float32), x,
                        preferred_element_type=jnp.float32, precision=hp)
             + bias(b1))
    pointfeat = relu(conv(w4, h) + bias(b4))
    h = relu(conv(w2, pointfeat) + bias(b2))
    h = relu(conv(w3, h) + bias(b3))
    g = jnp.max(h, axis=2, keepdims=True)
    g = relu(conv(wf1, g) + bias(bf1))
    g = relu(conv(wf2, g) + bias(bf2))
    n_pts = x.shape[-1]
    g = jnp.broadcast_to(g, (g.shape[0], g.shape[1], n_pts))
    cat = jnp.concatenate([g, pointfeat], axis=1)
    s = relu(conv(ws1, cat) + bias(bs1))
    s = relu(conv(ws2, s) + bias(bs2))
    s = conv(ws3, s) + bias(bs3)
    return jax.nn.sigmoid(s)[:, 0, :]


if __name__ == "__main__":
    scale_factor, n_feat = 2, 3
    key = jax.random.PRNGKey(0)
    kx, kp, kx2 = jax.random.split(key, 3)
    params = init_params(kp, scale_factor=scale_factor, n_feat=n_feat)

    # --- small-N case: fused single-pass kernel, batch-packed grid step ------
    B, N = 2, 128
    x = jax.random.normal(kx, (B, n_feat, N), jnp.float32)   # PyTorch NCW
    out = jax.block_until_ready(pointnet_seg_forward(x, params))
    assert out.shape == (B, N), out.shape

    ref_bf = ref_forward(x, params, matmul_dtype=jnp.bfloat16)  # matched prec.
    ref_hi = ref_forward(x, params, matmul_dtype=jnp.float32)   # f32 HIGHEST
    err_bf = float(jnp.max(jnp.abs(out - ref_bf)))
    err_hi = float(jnp.max(jnp.abs(out - ref_hi)))
    assert jnp.allclose(out, ref_bf, atol=1e-3, rtol=1e-3), err_bf
    assert jnp.allclose(out, ref_hi, atol=5e-2, rtol=5e-2), err_hi

    # --- N-tiled two-pass path (forced small tile to exercise the masking) ---
    B2, N2 = 2, 320                        # 320 = 2*128 + 64 -> padded tail
    x2 = jax.random.normal(kx2, (B2, n_feat, N2), jnp.float32)
    out2 = jax.block_until_ready(
        pointnet_seg_forward(x2, params, tiled=True, tile_n=128))
    assert out2.shape == (B2, N2), out2.shape

    ref2_bf = ref_forward(x2, params, matmul_dtype=jnp.bfloat16)
    ref2_hi = ref_forward(x2, params, matmul_dtype=jnp.float32)
    err2_bf = float(jnp.max(jnp.abs(out2 - ref2_bf)))
    err2_hi = float(jnp.max(jnp.abs(out2 - ref2_hi)))
    assert jnp.allclose(out2, ref2_bf, atol=1e-3, rtol=1e-3), err2_bf
    assert jnp.allclose(out2, ref2_hi, atol=5e-2, rtol=5e-2), err2_hi

    print("KERNEL_OK")
</pallas_src>

<mosaic_0001>
module attributes {stable_mosaic.version = 11 : i64} {
  func.func @kernel(%arg0: i32, %arg1: memref<2x3x128xf32, #tpu.memory_space<vmem>>, %arg2: memref<432x128xbf16, #tpu.memory_space<vmem>>, %arg3: memref<432x1xf32, #tpu.memory_space<vmem>>, %arg4: memref<2x1x128xf32, #tpu.memory_space<vmem>>) attributes {dimension_semantics = [#tpu.dimension_semantics<parallel>], iteration_bounds = array<i64: 1>, scalar_prefetch = 0 : i64, scratch_operands = 0 : i64, tpu.core_type = #tpu.core_type<tc>, window_params = [{transform_indices = @transform_0, window_bounds = array<i64: 2, 3, 128>}, {pipeline_mode = #tpu.pipeline_mode<synchronous>, transform_indices = @transform_1, window_bounds = array<i64: 432, 128>}, {pipeline_mode = #tpu.pipeline_mode<synchronous>, transform_indices = @transform_2, window_bounds = array<i64: 432, 1>}, {transform_indices = @transform_3, window_bounds = array<i64: 2, 1, 128>}]} {
    %c0 = arith.constant 0 : index
    %c0_0 = arith.constant 0 : index
    %c0_1 = arith.constant 0 : index
    %0 = vector.load %arg1[%c0, %c0_0, %c0_1] : memref<2x3x128xf32, #tpu.memory_space<vmem>>, vector<1x3x128xf32>
    %1 = vector.shape_cast %0 : vector<1x3x128xf32> to vector<3x128xf32>
    %c0_2 = arith.constant 0 : index
    %c0_3 = arith.constant 0 : index
    %2 = vector.load %arg2[%c0_2, %c0_3] : memref<432x128xbf16, #tpu.memory_space<vmem>>, vector<16x3xbf16>
    %3 = arith.extf %2 : vector<16x3xbf16> to vector<16x3xf32>
    %c0_4 = arith.constant 0 : index
    %c0_5 = arith.constant 0 : index
    %4 = vector.load %arg3[%c0_4, %c0_5] : memref<432x1xf32, #tpu.memory_space<vmem>>, vector<16x1xf32>
    %5 = vector.extract_strided_slice %3 {offsets = [0, 0], sizes = [16, 1], strides = [1, 1]} : vector<16x3xf32> to vector<16x1xf32>
    %6 = vector.extract_strided_slice %1 {offsets = [0, 0], sizes = [1, 128], strides = [1, 1]} : vector<3x128xf32> to vector<1x128xf32>
    %7 = vector.broadcast %5 : vector<16x1xf32> to vector<16x128xf32>
    %8 = vector.broadcast %6 : vector<1x128xf32> to vector<16x128xf32>
    %9 = arith.mulf %7, %8 : vector<16x128xf32>
    %10 = vector.broadcast %4 : vector<16x1xf32> to vector<16x128xf32>
    %11 = arith.addf %10, %9 : vector<16x128xf32>
    %12 = vector.extract_strided_slice %3 {offsets = [0, 1], sizes = [16, 1], strides = [1, 1]} : vector<16x3xf32> to vector<16x1xf32>
    %13 = vector.extract_strided_slice %1 {offsets = [1, 0], sizes = [1, 128], strides = [1, 1]} : vector<3x128xf32> to vector<1x128xf32>
    %14 = vector.broadcast %12 : vector<16x1xf32> to vector<16x128xf32>
    %15 = vector.broadcast %13 : vector<1x128xf32> to vector<16x128xf32>
    %16 = arith.mulf %14, %15 : vector<16x128xf32>
    %17 = arith.addf %11, %16 : vector<16x128xf32>
    %18 = vector.extract_strided_slice %3 {offsets = [0, 2], sizes = [16, 1], strides = [1, 1]} : vector<16x3xf32> to vector<16x1xf32>
    %19 = vector.extract_strided_slice %1 {offsets = [2, 0], sizes = [1, 128], strides = [1, 1]} : vector<3x128xf32> to vector<1x128xf32>
    %20 = vector.broadcast %18 : vector<16x1xf32> to vector<16x128xf32>
    %21 = vector.broadcast %19 : vector<1x128xf32> to vector<16x128xf32>
    %22 = arith.mulf %20, %21 : vector<16x128xf32>
    %23 = arith.addf %17, %22 : vector<16x128xf32>
    %cst = arith.constant 0.000000e+00 : f32
    %24 = vector.broadcast %cst : f32 to vector<16x128xf32>
    %25 = arith.maximumf %23, %24 : vector<16x128xf32>
    %c16 = arith.constant 16 : index
    %c0_6 = arith.constant 0 : index
    %26 = vector.load %arg2[%c16, %c0_6] : memref<432x128xbf16, #tpu.memory_space<vmem>>, vector<32x16xbf16>
    %27 = arith.truncf %25 : vector<16x128xf32> to vector<16x128xbf16>
    %cst_7 = arith.constant dense<0.000000e+00> : vector<32x128xf32>
    %28 = tpu.matmul %26, %27, %cst_7 {dimension_numbers = #tpu.dot_dimension_numbers<[1], [0], [0], [1], [0, 0, 1, 1], [], []>} : vector<32x16xbf16>, vector<16x128xbf16>, vector<32x128xf32> -> vector<32x128xf32>
    %c16_8 = arith.constant 16 : index
    %c0_9 = arith.constant 0 : index
    %29 = vector.load %arg3[%c16_8, %c0_9] : memref<432x1xf32, #tpu.memory_space<vmem>>, vector<32x1xf32>
    %30 = vector.broadcast %29 : vector<32x1xf32> to vector<32x128xf32>
    %31 = arith.addf %28, %30 : vector<32x128xf32>
    %cst_10 = arith.constant 0.000000e+00 : f32
    %32 = vector.broadcast %cst_10 : f32 to vector<32x128xf32>
    %33 = arith.maximumf %31, %32 : vector<32x128xf32>
    %c48 = arith.constant 48 : index
    %c0_11 = arith.constant 0 : index
    %34 = vector.load %arg2[%c48, %c0_11] : memref<432x128xbf16, #tpu.memory_space<vmem>>, vector<64x32xbf16>
    %35 = arith.truncf %33 : vector<32x128xf32> to vector<32x128xbf16>
    %cst_12 = arith.constant dense<0.000000e+00> : vector<64x128xf32>
    %36 = tpu.matmul %34, %35, %cst_12 {dimension_numbers = #tpu.dot_dimension_numbers<[1], [0], [0], [1], [0, 0, 1, 1], [], []>} : vector<64x32xbf16>, vector<32x128xbf16>, vector<64x128xf32> -> vector<64x128xf32>
    %c48_13 = arith.constant 48 : index
    %c0_14 = arith.constant 0 : index
    %37 = vector.load %arg3[%c48_13, %c0_14] : memref<432x1xf32, #tpu.memory_space<vmem>>, vector<64x1xf32>
    %38 = vector.broadcast %37 : vector<64x1xf32> to vector<64x128xf32>
    %39 = arith.addf %36, %38 : vector<64x128xf32>
    %cst_15 = arith.constant 0.000000e+00 : f32
    %40 = vector.broadcast %cst_15 : f32 to vector<64x128xf32>
    %41 = arith.maximumf %39, %40 : vector<64x128xf32>
    %c112 = arith.constant 112 : index
    %c0_16 = arith.constant 0 : index
    %42 = vector.load %arg2[%c112, %c0_16] : memref<432x128xbf16, #tpu.memory_space<vmem>>, vector<128x64xbf16>
    %43 = arith.truncf %41 : vector<64x128xf32> to vector<64x128xbf16>
    %cst_17 = arith.constant dense<0.000000e+00> : vector<128x128xf32>
    %44 = tpu.matmul %42, %43, %cst_17 {dimension_numbers = #tpu.dot_dimension_numbers<[1], [0], [0], [1], [0, 0, 1, 1], [], []>} : vector<128x64xbf16>, vector<64x128xbf16>, vector<128x128xf32> -> vector<128x128xf32>
    %c112_18 = arith.constant 112 : index
    %c0_19 = arith.constant 0 : index
    %45 = vector.load %arg3[%c112_18, %c0_19] : memref<432x1xf32, #tpu.memory_space<vmem>>, vector<128x1xf32>
    %46 = vector.broadcast %45 : vector<128x1xf32> to vector<128x128xf32>
    %47 = arith.addf %44, %46 : vector<128x128xf32>
    %cst_20 = arith.constant 0.000000e+00 : f32
    %48 = vector.broadcast %cst_20 : f32 to vector<128x128xf32>
    %49 = arith.maximumf %47, %48 : vector<128x128xf32>
    %cst_21 = arith.constant dense<0xFF800000> : vector<128xf32>
    %50 = vector.multi_reduction <maximumf>, %49, %cst_21 [1] : vector<128x128xf32> to vector<128xf32>
    %51 = vector.shape_cast %50 : vector<128xf32> to vector<128x1xf32>
    %c240 = arith.constant 240 : index
    %c0_22 = arith.constant 0 : index
    %52 = vector.load %arg2[%c240, %c0_22] : memref<432x128xbf16, #tpu.memory_space<vmem>>, vector<64x128xbf16>
    %53 = arith.truncf %51 : vector<128x1xf32> to vector<128x1xbf16>
    %cst_23 = arith.constant dense<0.000000e+00> : vector<64x1xf32>
    %54 = tpu.matmul %52, %53, %cst_23 {dimension_numbers = #tpu.dot_dimension_numbers<[1], [0], [0], [1], [0, 0, 1, 1], [], []>} : vector<64x128xbf16>, vector<128x1xbf16>, vector<64x1xf32> -> vector<64x1xf32>
    %c240_24 = arith.constant 240 : index
    %c0_25 = arith.constant 0 : index
    %55 = vector.load %arg3[%c240_24, %c0_25] : memref<432x1xf32, #tpu.memory_space<vmem>>, vector<64x1xf32>
    %56 = arith.addf %54, %55 : vector<64x1xf32>
    %cst_26 = arith.constant 0.000000e+00 : f32
    %57 = vector.broadcast %cst_26 : f32 to vector<64x1xf32>
    %58 = arith.maximumf %56, %57 : vector<64x1xf32>
    %c304 = arith.constant 304 : index
    %c0_27 = arith.constant 0 : index
    %59 = vector.load %arg2[%c304, %c0_27] : memref<432x128xbf16, #tpu.memory_space<vmem>>, vector<32x64xbf16>
    %60 = arith.truncf %58 : vector<64x1xf32> to vector<64x1xbf16>
    %cst_28 = arith.constant dense<0.000000e+00> : vector<32x1xf32>
    %61 = tpu.matmul %59, %60, %cst_28 {dimension_numbers = #tpu.dot_dimension_numbers<[1], [0], [0], [1], [0, 0, 1, 1], [], []>} : vector<32x64xbf16>, vector<64x1xbf16>, vector<32x1xf32> -> vector<32x1xf32>
    %c304_29 = arith.constant 304 : index
    %c0_30 = arith.constant 0 : index
    %62 = vector.load %arg3[%c304_29, %c0_30] : memref<432x1xf32, #tpu.memory_space<vmem>>, vector<32x1xf32>
    %63 = arith.addf %61, %62 : vector<32x1xf32>
    %cst_31 = arith.constant 0.000000e+00 : f32
    %64 = vector.broadcast %cst_31 : f32 to vector<32x1xf32>
    %65 = arith.maximumf %63, %64 : vector<32x1xf32>
    %c336 = arith.constant 336 : index
    %c0_32 = arith.constant 0 : index
    %66 = vector.load %arg2[%c336, %c0_32] : memref<432x128xbf16, #tpu.memory_space<vmem>>, vector<32x32xbf16>
    %67 = arith.truncf %65 : vector<32x1xf32> to vector<32x1xbf16>
    %cst_33 = arith.constant dense<0.000000e+00> : vector<32x1xf32>
    %68 = tpu.matmul %66, %67, %cst_33 {dimension_numbers = #tpu.dot_dimension_numbers<[1], [0], [0], [1], [0, 0, 1, 1], [], []>} : vector<32x32xbf16>, vector<32x1xbf16>, vector<32x1xf32> -> vector<32x1xf32>
    %c336_34 = arith.constant 336 : index
    %c0_35 = arith.constant 0 : index
    %69 = vector.load %arg3[%c336_34, %c0_35] : memref<432x1xf32, #tpu.memory_space<vmem>>, vector<32x1xf32>
    %70 = arith.addf %68, %69 : vector<32x1xf32>
    %c368 = arith.constant 368 : index
    %c0_36 = arith.constant 0 : index
    %71 = vector.load %arg2[%c368, %c0_36] : memref<432x128xbf16, #tpu.memory_space<vmem>>, vector<32x32xbf16>
    %72 = arith.truncf %33 : vector<32x128xf32> to vector<32x128xbf16>
    %cst_37 = arith.constant dense<0.000000e+00> : vector<32x128xf32>
    %73 = tpu.matmul %71, %72, %cst_37 {dimension_numbers = #tpu.dot_dimension_numbers<[1], [0], [0], [1], [0, 0, 1, 1], [], []>} : vector<32x32xbf16>, vector<32x128xbf16>, vector<32x128xf32> -> vector<32x128xf32>
    %74 = vector.broadcast %70 : vector<32x1xf32> to vector<32x128xf32>
    %75 = arith.addf %73, %74 : vector<32x128xf32>
    %cst_38 = arith.constant 0.000000e+00 : f32
    %76 = vector.broadcast %cst_38 : f32 to vector<32x128xf32>
    %77 = arith.maximumf %75, %76 : vector<32x128xf32>
    %c400 = arith.constant 400 : index
    %c0_39 = arith.constant 0 : index
    %78 = vector.load %arg2[%c400, %c0_39] : memref<432x128xbf16, #tpu.memory_space<vmem>>, vector<16x32xbf16>
    %79 = arith.truncf %77 : vector<32x128xf32> to vector<32x128xbf16>
    %cst_40 = arith.constant dense<0.000000e+00> : vector<16x128xf32>
    %80 = tpu.matmul %78, %79, %cst_40 {dimension_numbers = #tpu.dot_dimension_numbers<[1], [0], [0], [1], [0, 0, 1, 1], [], []>} : vector<16x32xbf16>, vector<32x128xbf16>, vector<16x128xf32> -> vector<16x128xf32>
    %c400_41 = arith.constant 400 : index
    %c0_42 = arith.constant 0 : index
    %81 = vector.load %arg3[%c400_41, %c0_42] : memref<432x1xf32, #tpu.memory_space<vmem>>, vector<16x1xf32>
    %82 = vector.broadcast %81 : vector<16x1xf32> to vector<16x128xf32>
    %83 = arith.addf %80, %82 : vector<16x128xf32>
    %cst_43 = arith.constant 0.000000e+00 : f32
    %84 = vector.broadcast %cst_43 : f32 to vector<16x128xf32>
    %85 = arith.maximumf %83, %84 : vector<16x128xf32>
    %c416 = arith.constant 416 : index
    %c0_44 = arith.constant 0 : index
    %86 = vector.load %arg2[%c416, %c0_44] : memref<432x128xbf16, #tpu.memory_space<vmem>>, vector<1x16xbf16>
    %87 = arith.truncf %85 : vector<16x128xf32> to vector<16x128xbf16>
    %cst_45 = arith.constant dense<0.000000e+00> : vector<1x128xf32>
    %88 = tpu.matmul %86, %87, %cst_45 {dimension_numbers = #tpu.dot_dimension_numbers<[1], [0], [0], [1], [0, 0, 1, 1], [], []>} : vector<1x16xbf16>, vector<16x128xbf16>, vector<1x128xf32> -> vector<1x128xf32>
    %c416_46 = arith.constant 416 : index
    %c0_47 = arith.constant 0 : index
    %89 = vector.load %arg3[%c416_46, %c0_47] : memref<432x1xf32, #tpu.memory_space<vmem>>, vector<1x1xf32>
    %90 = vector.broadcast %89 : vector<1x1xf32> to vector<1x128xf32>
    %91 = arith.addf %88, %90 : vector<1x128xf32>
    %92 = arith.negf %91 : vector<1x128xf32>
    %93 = math.exp %92 : vector<1x128xf32>
    %cst_48 = arith.constant 1.000000e+00 : f32
    %94 = vector.broadcast %cst_48 : f32 to vector<1x128xf32>
    %95 = arith.addf %94, %93 : vector<1x128xf32>
    %96 = arith.divf %94, %95 : vector<1x128xf32>
    %c0_49 = arith.constant 0 : index
    %c0_50 = arith.constant 0 : index
    %c0_51 = arith.constant 0 : index
    %97 = vector.load %arg4[%c0_49, %c0_50, %c0_51] : memref<2x1x128xf32, #tpu.memory_space<vmem>>, vector<1x1x128xf32>
    %98 = vector.shape_cast %97 : vector<1x1x128xf32> to vector<1x128xf32>
    %99 = vector.shape_cast %96 : vector<1x128xf32> to vector<1x1x128xf32>
    tpu.vector_store %arg4[%c0_49, %c0_50, %c0_51], %99 {strides = array<i32>} : memref<2x1x128xf32, #tpu.memory_space<vmem>>, vector<1x1x128xf32>,
    %c1 = arith.constant 1 : index
    %c0_52 = arith.constant 0 : index
    %c0_53 = arith.constant 0 : index
    %100 = vector.load %arg1[%c1, %c0_52, %c0_53] : memref<2x3x128xf32, #tpu.memory_space<vmem>>, vector<1x3x128xf32>
    %101 = vector.shape_cast %100 : vector<1x3x128xf32> to vector<3x128xf32>
    %c0_54 = arith.constant 0 : index
    %c0_55 = arith.constant 0 : index
    %102 = vector.load %arg2[%c0_54, %c0_55] : memref<432x128xbf16, #tpu.memory_space<vmem>>, vector<16x3xbf16>
    %103 = arith.extf %102 : vector<16x3xbf16> to vector<16x3xf32>
    %c0_56 = arith.constant 0 : index
    %c0_57 = arith.constant 0 : index
    %104 = vector.load %arg3[%c0_56, %c0_57] : memref<432x1xf32, #tpu.memory_space<vmem>>, vector<16x1xf32>
    %105 = vector.extract_strided_slice %103 {offsets = [0, 0], sizes = [16, 1], strides = [1, 1]} : vector<16x3xf32> to vector<16x1xf32>
    %106 = vector.extract_strided_slice %101 {offsets = [0, 0], sizes = [1, 128], strides = [1, 1]} : vector<3x128xf32> to vector<1x128xf32>
    %107 = vector.broadcast %105 : vector<16x1xf32> to vector<16x128xf32>
    %108 = vector.broadcast %106 : vector<1x128xf32> to vector<16x128xf32>
    %109 = arith.mulf %107, %108 : vector<16x128xf32>
    %110 = vector.broadcast %104 : vector<16x1xf32> to vector<16x128xf32>
    %111 = arith.addf %110, %109 : vector<16x128xf32>
    %112 = vector.extract_strided_slice %103 {offsets = [0, 1], sizes = [16, 1], strides = [1, 1]} : vector<16x3xf32> to vector<16x1xf32>
    %113 = vector.extract_strided_slice %101 {offsets = [1, 0], sizes = [1, 128], strides = [1, 1]} : vector<3x128xf32> to vector<1x128xf32>
    %114 = vector.broadcast %112 : vector<16x1xf32> to vector<16x128xf32>
    %115 = vector.broadcast %113 : vector<1x128xf32> to vector<16x128xf32>
    %116 = arith.mulf %114, %115 : vector<16x128xf32>
    %117 = arith.addf %111, %116 : vector<16x128xf32>
    %118 = vector.extract_strided_slice %103 {offsets = [0, 2], sizes = [16, 1], strides = [1, 1]} : vector<16x3xf32> to vector<16x1xf32>
    %119 = vector.extract_strided_slice %101 {offsets = [2, 0], sizes = [1, 128], strides = [1, 1]} : vector<3x128xf32> to vector<1x128xf32>
    %120 = vector.broadcast %118 : vector<16x1xf32> to vector<16x128xf32>
    %121 = vector.broadcast %119 : vector<1x128xf32> to vector<16x128xf32>
    %122 = arith.mulf %120, %121 : vector<16x128xf32>
    %123 = arith.addf %117, %122 : vector<16x128xf32>
    %cst_58 = arith.constant 0.000000e+00 : f32
    %124 = vector.broadcast %cst_58 : f32 to vector<16x128xf32>
    %125 = arith.maximumf %123, %124 : vector<16x128xf32>
    %c16_59 = arith.constant 16 : index
    %c0_60 = arith.constant 0 : index
    %126 = vector.load %arg2[%c16_59, %c0_60] : memref<432x128xbf16, #tpu.memory_space<vmem>>, vector<32x16xbf16>
    %127 = arith.truncf %125 : vector<16x128xf32> to vector<16x128xbf16>
    %cst_61 = arith.constant dense<0.000000e+00> : vector<32x128xf32>
    %128 = tpu.matmul %126, %127, %cst_61 {dimension_numbers = #tpu.dot_dimension_numbers<[1], [0], [0], [1], [0, 0, 1, 1], [], []>} : vector<32x16xbf16>, vector<16x128xbf16>, vector<32x128xf32> -> vector<32x128xf32>
    %c16_62 = arith.constant 16 : index
    %c0_63 = arith.constant 0 : index
    %129 = vector.load %arg3[%c16_62, %c0_63] : memref<432x1xf32, #tpu.memory_space<vmem>>, vector<32x1xf32>
    %130 = vector.broadcast %129 : vector<32x1xf32> to vector<32x128xf32>
    %131 = arith.addf %128, %130 : vector<32x128xf32>
    %cst_64 = arith.constant 0.000000e+00 : f32
    %132 = vector.broadcast %cst_64 : f32 to vector<32x128xf32>
    %133 = arith.maximumf %131, %132 : vector<32x128xf32>
    %c48_65 = arith.constant 48 : index
    %c0_66 = arith.constant 0 : index
    %134 = vector.load %arg2[%c48_65, %c0_66] : memref<432x128xbf16, #tpu.memory_space<vmem>>, vector<64x32xbf16>
    %135 = arith.truncf %133 : vector<32x128xf32> to vector<32x128xbf16>
    %cst_67 = arith.constant dense<0.000000e+00> : vector<64x128xf32>
    %136 = tpu.matmul %134, %135, %cst_67 {dimension_numbers = #tpu.dot_dimension_numbers<[1], [0], [0], [1], [0, 0, 1, 1], [], []>} : vector<64x32xbf16>, vector<32x128xbf16>, vector<64x128xf32> -> vector<64x128xf32>
    %c48_68 = arith.constant 48 : index
    %c0_69 = arith.constant 0 : index
    %137 = vector.load %arg3[%c48_68, %c0_69] : memref<432x1xf32, #tpu.memory_space<vmem>>, vector<64x1xf32>
    %138 = vector.broadcast %137 : vector<64x1xf32> to vector<64x128xf32>
    %139 = arith.addf %136, %138 : vector<64x128xf32>
    %cst_70 = arith.constant 0.000000e+00 : f32
    %140 = vector.broadcast %cst_70 : f32 to vector<64x128xf32>
    %141 = arith.maximumf %139, %140 : vector<64x128xf32>
    %c112_71 = arith.constant 112 : index
    %c0_72 = arith.constant 0 : index
    %142 = vector.load %arg2[%c112_71, %c0_72] : memref<432x128xbf16, #tpu.memory_space<vmem>>, vector<128x64xbf16>
    %143 = arith.truncf %141 : vector<64x128xf32> to vector<64x128xbf16>
    %cst_73 = arith.constant dense<0.000000e+00> : vector<128x128xf32>
    %144 = tpu.matmul %142, %143, %cst_73 {dimension_numbers = #tpu.dot_dimension_numbers<[1], [0], [0], [1], [0, 0, 1, 1], [], []>} : vector<128x64xbf16>, vector<64x128xbf16>, vector<128x128xf32> -> vector<128x128xf32>
    %c112_74 = arith.constant 112 : index
    %c0_75 = arith.constant 0 : index
    %145 = vector.load %arg3[%c112_74, %c0_75] : memref<432x1xf32, #tpu.memory_space<vmem>>, vector<128x1xf32>
    %146 = vector.broadcast %145 : vector<128x1xf32> to vector<128x128xf32>
    %147 = arith.addf %144, %146 : vector<128x128xf32>
    %cst_76 = arith.constant 0.000000e+00 : f32
    %148 = vector.broadcast %cst_76 : f32 to vector<128x128xf32>
    %149 = arith.maximumf %147, %148 : vector<128x128xf32>
    %cst_77 = arith.constant dense<0xFF800000> : vector<128xf32>
    %150 = vector.multi_reduction <maximumf>, %149, %cst_77 [1] : vector<128x128xf32> to vector<128xf32>
    %151 = vector.shape_cast %150 : vector<128xf32> to vector<128x1xf32>
    %c240_78 = arith.constant 240 : index
    %c0_79 = arith.constant 0 : index
    %152 = vector.load %arg2[%c240_78, %c0_79] : memref<432x128xbf16, #tpu.memory_space<vmem>>, vector<64x128xbf16>
    %153 = arith.truncf %151 : vector<128x1xf32> to vector<128x1xbf16>
    %cst_80 = arith.constant dense<0.000000e+00> : vector<64x1xf32>
    %154 = tpu.matmul %152, %153, %cst_80 {dimension_numbers = #tpu.dot_dimension_numbers<[1], [0], [0], [1], [0, 0, 1, 1], [], []>} : vector<64x128xbf16>, vector<128x1xbf16>, vector<64x1xf32> -> vector<64x1xf32>
    %c240_81 = arith.constant 240 : index
    %c0_82 = arith.constant 0 : index
    %155 = vector.load %arg3[%c240_81, %c0_82] : memref<432x1xf32, #tpu.memory_space<vmem>>, vector<64x1xf32>
    %156 = arith.addf %154, %155 : vector<64x1xf32>
    %cst_83 = arith.constant 0.000000e+00 : f32
    %157 = vector.broadcast %cst_83 : f32 to vector<64x1xf32>
    %158 = arith.maximumf %156, %157 : vector<64x1xf32>
    %c304_84 = arith.constant 304 : index
    %c0_85 = arith.constant 0 : index
    %159 = vector.load %arg2[%c304_84, %c0_85] : memref<432x128xbf16, #tpu.memory_space<vmem>>, vector<32x64xbf16>
    %160 = arith.truncf %158 : vector<64x1xf32> to vector<64x1xbf16>
    %cst_86 = arith.constant dense<0.000000e+00> : vector<32x1xf32>
    %161 = tpu.matmul %159, %160, %cst_86 {dimension_numbers = #tpu.dot_dimension_numbers<[1], [0], [0], [1], [0, 0, 1, 1], [], []>} : vector<32x64xbf16>, vector<64x1xbf16>, vector<32x1xf32> -> vector<32x1xf32>
    %c304_87 = arith.constant 304 : index
    %c0_88 = arith.constant 0 : index
    %162 = vector.load %arg3[%c304_87, %c0_88] : memref<432x1xf32, #tpu.memory_space<vmem>>, vector<32x1xf32>
    %163 = arith.addf %161, %162 : vector<32x1xf32>
    %cst_89 = arith.constant 0.000000e+00 : f32
    %164 = vector.broadcast %cst_89 : f32 to vector<32x1xf32>
    %165 = arith.maximumf %163, %164 : vector<32x1xf32>
    %c336_90 = arith.constant 336 : index
    %c0_91 = arith.constant 0 : index
    %166 = vector.load %arg2[%c336_90, %c0_91] : memref<432x128xbf16, #tpu.memory_space<vmem>>, vector<32x32xbf16>
    %167 = arith.truncf %165 : vector<32x1xf32> to vector<32x1xbf16>
    %cst_92 = arith.constant dense<0.000000e+00> : vector<32x1xf32>
    %168 = tpu.matmul %166, %167, %cst_92 {dimension_numbers = #tpu.dot_dimension_numbers<[1], [0], [0], [1], [0, 0, 1, 1], [], []>} : vector<32x32xbf16>, vector<32x1xbf16>, vector<32x1xf32> -> vector<32x1xf32>
    %c336_93 = arith.constant 336 : index
    %c0_94 = arith.constant 0 : index
    %169 = vector.load %arg3[%c336_93, %c0_94] : memref<432x1xf32, #tpu.memory_space<vmem>>, vector<32x1xf32>
    %170 = arith.addf %168, %169 : vector<32x1xf32>
    %c368_95 = arith.constant 368 : index
    %c0_96 = arith.constant 0 : index
    %171 = vector.load %arg2[%c368_95, %c0_96] : memref<432x128xbf16, #tpu.memory_space<vmem>>, vector<32x32xbf16>
    %172 = arith.truncf %133 : vector<32x128xf32> to vector<32x128xbf16>
    %cst_97 = arith.constant dense<0.000000e+00> : vector<32x128xf32>
    %173 = tpu.matmul %171, %172, %cst_97 {dimension_numbers = #tpu.dot_dimension_numbers<[1], [0], [0], [1], [0, 0, 1, 1], [], []>} : vector<32x32xbf16>, vector<32x128xbf16>, vector<32x128xf32> -> vector<32x128xf32>
    %174 = vector.broadcast %170 : vector<32x1xf32> to vector<32x128xf32>
    %175 = arith.addf %173, %174 : vector<32x128xf32>
    %cst_98 = arith.constant 0.000000e+00 : f32
    %176 = vector.broadcast %cst_98 : f32 to vector<32x128xf32>
    %177 = arith.maximumf %175, %176 : vector<32x128xf32>
    %c400_99 = arith.constant 400 : index
    %c0_100 = arith.constant 0 : index
    %178 = vector.load %arg2[%c400_99, %c0_100] : memref<432x128xbf16, #tpu.memory_space<vmem>>, vector<16x32xbf16>
    %179 = arith.truncf %177 : vector<32x128xf32> to vector<32x128xbf16>
    %cst_101 = arith.constant dense<0.000000e+00> : vector<16x128xf32>
    %180 = tpu.matmul %178, %179, %cst_101 {dimension_numbers = #tpu.dot_dimension_numbers<[1], [0], [0], [1], [0, 0, 1, 1], [], []>} : vector<16x32xbf16>, vector<32x128xbf16>, vector<16x128xf32> -> vector<16x128xf32>
    %c400_102 = arith.constant 400 : index
    %c0_103 = arith.constant 0 : index
    %181 = vector.load %arg3[%c400_102, %c0_103] : memref<432x1xf32, #tpu.memory_space<vmem>>, vector<16x1xf32>
    %182 = vector.broadcast %181 : vector<16x1xf32> to vector<16x128xf32>
    %183 = arith.addf %180, %182 : vector<16x128xf32>
    %cst_104 = arith.constant 0.000000e+00 : f32
    %184 = vector.broadcast %cst_104 : f32 to vector<16x128xf32>
    %185 = arith.maximumf %183, %184 : vector<16x128xf32>
    %c416_105 = arith.constant 416 : index
    %c0_106 = arith.constant 0 : index
    %186 = vector.load %arg2[%c416_105, %c0_106] : memref<432x128xbf16, #tpu.memory_space<vmem>>, vector<1x16xbf16>
    %187 = arith.truncf %185 : vector<16x128xf32> to vector<16x128xbf16>
    %cst_107 = arith.constant dense<0.000000e+00> : vector<1x128xf32>
    %188 = tpu.matmul %186, %187, %cst_107 {dimension_numbers = #tpu.dot_dimension_numbers<[1], [0], [0], [1], [0, 0, 1, 1], [], []>} : vector<1x16xbf16>, vector<16x128xbf16>, vector<1x128xf32> -> vector<1x128xf32>
    %c416_108 = arith.constant 416 : index
    %c0_109 = arith.constant 0 : index
    %189 = vector.load %arg3[%c416_108, %c0_109] : memref<432x1xf32, #tpu.memory_space<vmem>>, vector<1x1xf32>
    %190 = vector.broadcast %189 : vector<1x1xf32> to vector<1x128xf32>
    %191 = arith.addf %188, %190 : vector<1x128xf32>
    %192 = arith.negf %191 : vector<1x128xf32>
    %193 = math.exp %192 : vector<1x128xf32>
    %cst_110 = arith.constant 1.000000e+00 : f32
    %194 = vector.broadcast %cst_110 : f32 to vector<1x128xf32>
    %195 = arith.addf %194, %193 : vector<1x128xf32>
    %196 = arith.divf %194, %195 : vector<1x128xf32>
    %c1_111 = arith.constant 1 : index
    %c0_112 = arith.constant 0 : index
    %c0_113 = arith.constant 0 : index
    %197 = vector.load %arg4[%c1_111, %c0_112, %c0_113] : memref<2x1x128xf32, #tpu.memory_space<vmem>>, vector<1x1x128xf32>
    %198 = vector.shape_cast %197 : vector<1x1x128xf32> to vector<1x128xf32>
    %199 = vector.shape_cast %196 : vector<1x128xf32> to vector<1x1x128xf32>
    tpu.vector_store %arg4[%c1_111, %c0_112, %c0_113], %199 {strides = array<i32>} : memref<2x1x128xf32, #tpu.memory_space<vmem>>, vector<1x1x128xf32>,
    return
  }
  func.func @transform_0(%arg0: i32) -> (i32, i32, i32) {
    %c0_i32 = arith.constant 0 : i32
    %c0_i32_0 = arith.constant 0 : i32
    %c0_i32_1 = arith.constant 0 : i32
    return %arg0, %c0_i32, %c0_i32_0 : i32, i32, i32
  }
  func.func @transform_1(%arg0: i32) -> (i32, i32) {
    %c0_i32 = arith.constant 0 : i32
    %c0_i32_0 = arith.constant 0 : i32
    %c0_i32_1 = arith.constant 0 : i32
    return %c0_i32, %c0_i32_0 : i32, i32
  }
  func.func @transform_2(%arg0: i32) -> (i32, i32) {
    %c0_i32 = arith.constant 0 : i32
    %c0_i32_0 = arith.constant 0 : i32
    %c0_i32_1 = arith.constant 0 : i32
    return %c0_i32, %c0_i32_0 : i32, i32
  }
  func.func @transform_3(%arg0: i32) -> (i32, i32, i32) {
    %c0_i32 = arith.constant 0 : i32
    %c0_i32_0 = arith.constant 0 : i32
    %c0_i32_1 = arith.constant 0 : i32
    return %arg0, %c0_i32, %c0_i32_0 : i32, i32, i32
  }
}

</mosaic_0001>

<bundles_post_ra>
// kernel: tpu_custom_call.1
= control target key start
LH: loop header
LB: loop body
LE: loop exit
PB: predicated region body
PF: predicated region fallthrough
CT: control target
= control target key end

     0   :  { %v2144_v2 = vmov 0   ;;  %v2768_v5 = vmov 2   ;;  %s2764_s0 = inlined_call_operand.vmem [shape: f32[2,3,128], index: 0, kind: input, shape index: {}]   ;;  %s2765_s1 = inlined_call_operand.vmem [shape: bf16[432,128], index: 1, kind: input, shape index: {}]   ;;  %s2766_s2 = inlined_call_operand.vmem [shape: f32[432,1], index: 2, kind: input, shape index: {}]   ;;  %s2767_s3 = inlined_call_operand.hbm [shape: f32[2,1,128], index: 3, kind: output, shape index: {}]  }
   0x1   :  { %v2173_v0 = vld [vmem:[%s2766_s2 + $0x8] sm:$0xff]  ;;  %v2057_v1 = vld [vmem:[%s2765_s1] sm:$0xff]   ;;  %2076 = vset.pattern.permute.xlu1 %v2144_v2  ;;  %2070 = vset.pattern.permute.xlu0 %v2144_v2 }
   0x2   :  { %v2058_v3 = vunpack.c.l.bf16 %v2057_v1  ;;  %v2059_v4 = vunpack.c.h.bf16 %v2057_v1  ;;  %43 = vperm.xlu1 %2076, %v2173_v0   ;;  %2083 = vset.pattern.permute.xlu2 %v2768_v5 }
   0x3   :  { %8 = vsyncpa [#allocation3], 0  ;;  %v2146_v7 = vmov 1   ;;  %v2190_v8 = vld [vmem:[%s2766_s2] sm:$0xff]  ;;  %v2198_v9 = vld [vmem:[%s2766_s2 + $0x28] sm:$0xff]  ;;  %vm115_vm0 = vcmask 130048  }
   0x4   :  { %v2182_v6 = vpack.i.bf16 %v2059_v4, %v2058_v3  ;;  %v2205_v10 = vld [vmem:[%s2766_s2 + $0x60] sm:$0xff]  ;;  %v2211_v11 = vld [vmem:[%s2766_s2 + $0x58] sm:$0xff]  ;;  %v2217_v12 = vld [vmem:[%s2766_s2 + $0x30] sm:$0xff]  ;;  %vm223_vm1 = vcmask 261120   ;;  %vm429_vm2 = vcmask 523264   ;;  %s2147_s4 = smov [#allocation2]  }
   0x5   :  { %v2223_v13 = vld [vmem:[%s2766_s2 + $0xe8] sm:$0xff]  ;;  %v2229_v14 = vld [vmem:[%s2766_s2 + $0xc0] sm:$0xff]  ;;  %v2235_v15 = vld [vmem:[%s2766_s2 + $0xb8] sm:$0xff]  ;;  %s1747_s7 = sshll.u32 %s2767_s3, 4  ;;  %s2148_s8 = smov 16   ;;  %s1748_s7 = int_to_ptr.hbm [resolvable:$true] %s1747_s7 }
   0x6   :  { %2072 = vperm.xlu0 %2070, %v2182_v6   ;;  %2085 = vperm.xlu2 %2083, %v2182_v6   ;;  %v297_v16 = vld [vmem:[%s2766_s2 + $0x90] sm:$0xff]  ;;  %v296_v17 = vld [vmem:[%s2766_s2 + $0x88] sm:$0xff]  ;;  %v2253_v19 = vld [vmem:[%s2766_s2 + $0x20] sm:$0xff]  ;;  %s2149_s9 = smov 1  }
   0x7   :  { %v2247_v18 = vld [vmem:[%s2766_s2 + $0x10] sm:$0xff]  ;;  %v2258_v20 = vld [vmem:[%s2766_s2 + $0x68] sm:$0xff]  ;;  %v2265_v21 = vld [vmem:[%s2766_s2 + $0x18] sm:$0xff] }
   0x8   :  { %v2270_v22 = vld [vmem:[%s2766_s2 + $0x40] sm:$0xff]  ;;  %v2277_v23 = vld [vmem:[%s2766_s2 + $0x50] sm:$0xff]  ;;  %v2282_v24 = vld [vmem:[%s2766_s2 + $0x38] sm:$0xff] }
   0x9   :  { %v16_v26 = vld [vmem:[%s2764_s0] sm:$0x7]  ;;  %v2292_v28 = vld [vmem:[%s2766_s2 + $0x48] sm:$0xff]  ;;  %v2297_v29 = vld [vmem:[%s2766_s2 + $0xd0] sm:$0xff] }
   0xa   :  { %2077 = vset.pattern.permute.xlu1 %v2146_v7  ;;  %v33_v31 = vperm.slane %v16_v26, 0  ;;  %v69_v36 = vperm.slane %v16_v26, 2  ;;  %v56_v38 = vperm.slane %v16_v26, 1  ;;  %v2304_v46 = vld [vmem:[%s2766_s2 + $0xe0] sm:$0xff]  ;;  %v2309_v47 = vld [vmem:[%s2766_s2 + $0xc8] sm:$0xff]  ;;  %v2316_v58 = vld [vmem:[%s2766_s2 + $0xd8] sm:$0xff] }
   0xb   :  { %2079 = vperm.xlu1 %2077, %v2182_v6   ;;  %v2321_v60 = vld [vmem:[%s2766_s2 + $0xa0] sm:$0xff]  ;;  %v2006_v61 = vld [vmem:[%s2765_s1 + $0x8] sm:$0xff]  ;;  %v2332_v62 = vld [vmem:[%s2766_s2 + $0xb0] sm:$0xff] }
   0xc   :  { %v2337_v63 = vld [vmem:[%s2766_s2 + $0x98] sm:$0xff]  ;;  %v2344_v1 = vld [vmem:[%s2766_s2 + $0xa8] sm:$0xff]  ;;  %v2349_v3 = vld [vmem:[%s2766_s2 + $0x70] sm:$0xff] }
   0xd   :  { %v2007_v4 = vld [vmem:[%s2765_s1 + $0x10] sm:$0xff] }
   0xe   :  { %38 = vperm.xlu0 %2070, %v2190_v8   ;;  %2089 = vset.pattern.permute.xlu2 %v2144_v2 }
   0xf   :  { %97 = vperm.xlu2 %2089, %v2253_v19  }
  0x13   :  { %2090 = vset.pattern.permute.xlu1 %v2144_v2 }
  0x14   :  { %87 = vperm.xlu1 %2090, %v2247_v18  }
  0x16   :  { %102 = vperm.xlu0 %2070, %v2198_v9  }
  0x17   :  { %92 = vperm.xlu2 %2089, %v2265_v21  }
  0x1c   :  { %200 = vperm.xlu1 %2090, %v2258_v20  }
  0x1e   :  { %195 = vperm.xlu0 %2070, %v2205_v10  }
  0x1f   :  { %185 = vperm.xlu2 %2089, %v2277_v23  }
  0x24   :  { %175 = vperm.xlu1 %2090, %v2270_v22  }
  0x26   :  { %190 = vperm.xlu0 %2070, %v2211_v11  }
  0x27   :  { %180 = vperm.xlu2 %2089, %v2292_v28  }
  0x2c   :  { %170 = vperm.xlu1 %2090, %v2282_v24  }
  0x2e   :  { %165 = vperm.xlu0 %2070, %v2217_v12  }
  0x2f   :  { %381 = vperm.xlu2 %2089, %v2304_v46  }
  0x34   :  { %371 = vperm.xlu1 %2090, %v2297_v29  }
  0x36   :  { %386 = vperm.xlu0 %2070, %v2223_v13  }
  0x37   :  { %376 = vperm.xlu2 %2089, %v2316_v58  }
  0x3c   :  { %366 = vperm.xlu1 %2090, %v2309_v47  }
  0x3e   :  { %361 = vperm.xlu0 %2070, %v2229_v14  }
  0x3f   :  { %351 = vperm.xlu2 %2089, %v2332_v62  }
  0x44   :  { %341 = vperm.xlu1 %2090, %v2321_v60  }
  0x46   :  { %356 = vperm.xlu0 %2070, %v2235_v15  }
  0x47   :  { %346 = vperm.xlu2 %2089, %v2344_v1  }
  0x4c   :  { %336 = vperm.xlu1 %2090, %v2337_v63  }
  0x4e   :  { %331 = vperm.xlu0 %2070, %v297_v16   ;;  %v2360_v16 = vld [vmem:[%s2766_s2 + $0x80] sm:$0xff] }
  0x4f   :  { %321 = vperm.xlu2 %2089, %v2360_v16  }
  0x54   :  { %311 = vperm.xlu1 %2090, %v2349_v3  }
  0x56   :  { %326 = vperm.xlu0 %2070, %v296_v17   ;;  %v2366_v17 = vld [vmem:[%s2766_s2 + $0x78] sm:$0xff] }
  0x57   :  { %316 = vperm.xlu2 %2089, %v2366_v17  }
  0x60   :  { %v2086_v32 = vpop.permute.xlu2 %2085 }
  0x61   :  { %v2088_v34 = vunpack.i.h.bf16 %v2086_v32  ;;  %v2087_v35 = vunpack.i.l.bf16 %v2086_v32 }
  0x63   :  { %v70_v43 = vmul.f32 %v2087_v35, %v69_v36  ;;  %v71_v44 = vmul.f32 %v2088_v34, %v69_v36 }
  0x74   :  { %v44_v25 = vpop.permute.xlu1 %43 }
  0x78   :  { %v2073_v27 = vpop.permute.xlu0 %2072 }
  0x79   :  { %v2075_v30 = vunpack.i.h.bf16 %v2073_v27  ;;  %v2074_v33 = vunpack.i.l.bf16 %v2073_v27  ;;  %v98_v27 = vpop.permute.xlu2 %97 }
  0x7b   :  { %v35_v37 = vmul.f32 %v2075_v30, %v33_v31  ;;  %v34_v42 = vmul.f32 %v2074_v33, %v33_v31 }
  0x7d   :  { %v2080_v39 = vpop.permute.xlu1 %2079  ;;  %v47_v48 = vadd.f32 %v44_v25, %v35_v37 }
  0x7e   :  { %v2082_v40 = vunpack.i.h.bf16 %v2080_v39  ;;  %v2081_v41 = vunpack.i.l.bf16 %v2080_v39 }
  0x80   :  { %v39_v45 = vpop.permute.xlu0 %38  ;;  %v57_v49 = vmul.f32 %v2081_v41, %v56_v38  ;;  %v58_v50 = vmul.f32 %v2082_v40, %v56_v38 }
  0x81   :  { %v46_v51 = vadd.f32 %v39_v45, %v34_v42  ;;  %v93_v33 = vpop.permute.xlu2 %92  ;;  %v2008_v45 = vld [vmem:[%s2765_s1 + $0x18] sm:$0xff] }
  0x82   :  { %v60_v53 = vadd.f32 %v58_v50, %v47_v48  ;;  %v2009_v48 = vld [vmem:[%s2765_s1 + $0x20] sm:$0xff]  ;;  %v2011_v50 = vld [vmem:[%s2765_s1 + $0x30] sm:$0xff] }
  0x83   :  { %v59_v52 = vadd.f32 %v57_v49, %v46_v51  ;;  %v2010_v49 = vld [vmem:[%s2765_s1 + $0x28] sm:$0xff] }
  0x84   :  { %v73_v55 = vadd.f32 %v71_v44, %v60_v53 }
  0x85   :  { %v72_v54 = vadd.f32 %v70_v43, %v59_v52 }
  0x86   :  { %v75_v57 = vmax.f32 %v73_v55, 0.0  ;;  %v88_v37 = vpop.permute.xlu1 %87 }
  0x87   :  { %v74_v56 = vmax.f32 %v72_v54, 0.0 }
  0x88   :  { %v103_v31 = vpop.permute.xlu0 %102 }
  0x89   :  { %v80_v59 = vpack.c.bf16 %v75_v57, %v74_v56 }
  0x8b   :  { %129 = vmatpush.bf16.msra.mxu3 %v80_v59 }
  0x8e   :  { %1767 = vmatmul.msk.bf16.vlgmr.msra.gmra.mxu3 %vm115_vm0, %v2006_v61  ;;  %v201_v57 = vpop.permute.xlu1 %200 }
  0x90   :  { %v196_v59 = vpop.permute.xlu0 %195 }
  0x9e   :  { %1768 = vmatmul.msk.bf16.gmra.mxu3 %vm115_vm0, %v2007_v4  ;;  %v186_v4 = vpop.permute.xlu2 %185 }
 0x111   :  { %v131_v25 = vpop.f32.mrf.mxu3 }
 0x112   :  { %v132_v38 = vadd.f32 %v131_v25, %v88_v37  ;;  %v176_v25 = vpop.permute.xlu1 %175 }
 0x114   :  { %v141_v43 = vmax.f32 %v132_v38, 0.0 }
 0x119   :  { %v133_v26 = vpop.f32.mrf.mxu3 }
 0x11a   :  { %v134_v35 = vadd.f32 %v133_v26, %v93_v33 }
 0x11c   :  { %v142_v41 = vmax.f32 %v134_v35, 0.0 }
 0x11e   :  { %v153_v44 = vpack.c.bf16 %v142_v41, %v141_v43 }
 0x121   :  { %v136_v30 = vpop.f32.mrf.mxu3 }
 0x122   :  { %v137_v32 = vadd.f32 %v136_v30, %v98_v27  ;;  %v191_v27 = vpop.permute.xlu0 %190 }
 0x124   :  { %v143_v39 = vmax.f32 %v137_v32, 0.0 }
 0x129   :  { %v138_v34 = vpop.f32.mrf.mxu3 }
 0x12a   :  { %v139_v36 = vadd.f32 %v138_v34, %v103_v31 }
 0x12c   :  { %v144_v40 = vmax.f32 %v139_v36, 0.0  ;;  %v181_v36 = vpop.permute.xlu2 %180 }
 0x12e   :  { %v154_v42 = vpack.c.bf16 %v144_v40, %v143_v39 }
 0x130   :  { %242 = vmatpush.bf16.msra.mxu1 %v154_v42 }
 0x134   :  { %243 = vmatpush.bf16.msra.mxu1 %v153_v44 }
 0x137   :  { %1785 = vmatmul.msk.bf16.vlgmr.msra.gmra.mxu1 %vm223_vm1, %v2008_v45 }
 0x138   :  { %778 = vmatpush.bf16.msrb.mxu1 %v154_v42  ;;  %v171_v42 = vpop.permute.xlu1 %170 }
 0x13c   :  { %779 = vmatpush.bf16.msrb.mxu1 %v153_v44 }
 0x147   :  { %1786 = vmatmul.msk.bf16.gmra.mxu1 %vm223_vm1, %v2009_v48  ;;  %v166_v48 = vpop.permute.xlu0 %165 }
 0x157   :  { %1787 = vmatmul.msk.bf16.gmra.mxu1 %vm223_vm1, %v2010_v49 }
 0x167   :  { %1788 = vmatmul.msk.bf16.gmra.mxu1 %vm223_vm1, %v2011_v50 }
 0x1b4   :  { %v245_v51 = vpop.f32.mrf.mxu1 }
 0x1b5   :  { %v246_v49 = vadd.f32 %v245_v51, %v166_v48  ;;  %v2014_v51 = vld [vmem:[%s2765_s1 + $0x48] sm:$0xff] }
 0x1bc   :  { %v247_v52 = vpop.f32.mrf.mxu1 }
 0x1bd   :  { %v248_v43 = vadd.f32 %v247_v52, %v171_v42  ;;  %v2013_v52 = vld [vmem:[%s2765_s1 + $0x40] sm:$0xff] }
 0x1c4   :  { %v250_v53 = vpop.f32.mrf.mxu1 }
 0x1c5   :  { %v251_v40 = vadd.f32 %v250_v53, %v176_v25  ;;  %v2015_v53 = vld [vmem:[%s2765_s1 + $0x50] sm:$0xff]  ;;  %v2018_v25 = vld [vmem:[%s2765_s1 + $0x68] sm:$0xff] }
 0x1c7   :  { %v267_v50 = vmax.f32 %v251_v40, 0.0 }
 0x1cc   :  { %v252_v54 = vpop.f32.mrf.mxu1 }
 0x1cd   :  { %v253_v37 = vadd.f32 %v252_v54, %v181_v36  ;;  %v2012_v54 = vld [vmem:[%s2765_s1 + $0x38] sm:$0xff] }
 0x1cf   :  { %v268_v44 = vmax.f32 %v253_v37, 0.0 }
 0x1d4   :  { %v255_v55 = vpop.f32.mrf.mxu1 }
 0x1d5   :  { %v256_v33 = vadd.f32 %v255_v55, %v186_v4  ;;  %v265_v55 = vmax.f32 %v246_v49, 0.0  ;;  %v2017_v4 = vld [vmem:[%s2765_s1 + $0x60] sm:$0xff]  ;;  %v372_v49 = vpop.permute.xlu1 %371 }
 0x1d7   :  { %v269_v41 = vmax.f32 %v256_v33, 0.0 }
 0x1dc   :  { %v257_v56 = vpop.f32.mrf.mxu1 }
 0x1dd   :  { %v258_v31 = vadd.f32 %v257_v56, %v191_v27  ;;  %v266_v56 = vmax.f32 %v248_v43, 0.0 }
 0x1df   :  { %v270_v38 = vmax.f32 %v258_v31, 0.0 }
 0x1e1   :  { %v291_v45 = vpack.c.bf16 %v270_v38, %v269_v41  ;;  %v387_v38 = vpop.permute.xlu0 %386 }
 0x1e4   :  { %v260_v61 = vpop.f32.mrf.mxu1 }
 0x1e5   :  { %v261_v26 = vadd.f32 %v260_v61, %v196_v59  ;;  %v289_v59 = vpack.c.bf16 %v266_v56, %v265_v55  ;;  %v2016_v61 = vld [vmem:[%s2765_s1 + $0x58] sm:$0xff] }
 0x1e7   :  { %v271_v34 = vmax.f32 %v261_v26, 0.0  ;;  %v2019_v26 = vld [vmem:[%s2765_s1 + $0x70] sm:$0xff] }
 0x1e9   :  { %v362_v40 = vpop.permute.xlu0 %361 }
 0x1ec   :  { %v262_v30 = vpop.f32.mrf.mxu1 }
 0x1ed   :  { %v263_v32 = vadd.f32 %v262_v30, %v201_v57  ;;  %v290_v57 = vpack.c.bf16 %v268_v44, %v267_v50  ;;  %v382_v44 = vpop.permute.xlu2 %381 }
 0x1ef   :  { %v272_v35 = vmax.f32 %v263_v32, 0.0 }
 0x1f1   :  { %v292_v39 = vpack.c.bf16 %v272_v35, %v271_v34 }
 0x1f3   :  { %458 = vmatpush.bf16.msra.mxu2 %v292_v39 }
 0x1f5   :  { %v377_v48 = vpop.permute.xlu2 %376 }
 0x1f7   :  { %459 = vmatpush.bf16.msra.mxu2 %v291_v45 }
 0x1fb   :  { %460 = vmatpush.bf16.msra.mxu2 %v290_v57 }
 0x1ff   :  { %461 = vmatpush.bf16.msra.mxu2 %v289_v59  ;;  %v352_v59 = vpop.permute.xlu2 %351 }
 0x202   :  { %1821 = vmatmul.msk.bf16.vlgmr.msra.gmra.mxu2 %vm429_vm2, %v2012_v54 }
 0x212   :  { %1822 = vmatmul.msk.bf16.gmra.mxu2 %vm429_vm2, %v2013_v52 }
 0x222   :  { %1823 = vmatmul.msk.bf16.gmra.mxu2 %vm429_vm2, %v2014_v51 }
 0x232   :  { %1824 = vmatmul.msk.bf16.gmra.mxu2 %vm429_vm2, %v2015_v53 }
 0x242   :  { %1825 = vmatmul.msk.bf16.gmra.mxu2 %vm429_vm2, %v2016_v61 }
 0x252   :  { %1826 = vmatmul.msk.bf16.gmra.mxu2 %vm429_vm2, %v2017_v4  ;;  %v357_v4 = vpop.permute.xlu0 %356 }
 0x25a   :  { %v332_v5 = vpop.permute.xlu0 %331 }
 0x262   :  { %1827 = vmatmul.msk.bf16.gmra.mxu2 %vm429_vm2, %v2018_v25  ;;  %v347_v25 = vpop.permute.xlu2 %346 }
 0x272   :  { %1828 = vmatmul.msk.bf16.gmra.mxu2 %vm429_vm2, %v2019_v26 }
 0x285   :  { %v2417_v27 = vpop.f32.mrf.mxu2 }
 0x28d   :  { %v2419_v30 = vpop.f32.mrf.mxu2 }
 0x295   :  { %v468_v31 = vpop.f32.mrf.mxu2 }
 0x29d   :  { %v470_v32 = vpop.f32.mrf.mxu2 }
 0x2a5   :  { %v473_v33 = vpop.f32.mrf.mxu2 }
 0x2ad   :  { %v2421_v34 = vpop.f32.mrf.mxu2 }
 0x2b5   :  { %v478_v35 = vpop.f32.mrf.mxu2 }
 0x2bd   :  { %v480_v36 = vpop.f32.mrf.mxu2 }
 0x2c5   :  { %v483_v37 = vpop.f32.mrf.mxu2 }
 0x2c6   :  { %v484_v51 = vadd.f32 %v483_v37, %v352_v59  ;;  %v474_v37 = vadd.f32 %v473_v33, %v332_v5 }
 0x2c8   :  { %v511_v26 = vmax.f32 %v484_v51, 0.0 }
 0x2cd   :  { %v485_v39 = vpop.f32.mrf.mxu2 }
 0x2d5   :  { %v488_v41 = vpop.f32.mrf.mxu2 }
 0x2d6   :  { %v489_v42 = vadd.f32 %v488_v41, %v362_v40  ;;  %v486_v41 = vadd.f32 %v485_v39, %v357_v4 }
 0x2d8   :  { %v513_v43 = vmax.f32 %v489_v42, 0.0  ;;  %v367_v42 = vpop.permute.xlu1 %366 }
 0x2da   :  { %539 = vmax.xlane.f32.xlu0 %v513_v43  ;;  %v481_v43 = vadd.f32 %v480_v36, %v347_v25  ;;  %v327_v36 = vpop.permute.xlu0 %326 }
 0x2db   :  { %v471_v39 = vadd.f32 %v470_v32, %v327_v36 }
 0x2dd   :  { %v490_v45 = vpop.f32.mrf.mxu2  ;;  %v506_v25 = vmax.f32 %v471_v39, 0.0 }
 0x2e5   :  { %v493_v50 = vpop.f32.mrf.mxu2 }
 0x2e6   :  { %v494_v56 = vadd.f32 %v493_v50, %v372_v49 }
 0x2e8   :  { %v515_v57 = vmax.f32 %v494_v56, 0.0  ;;  %v512_v56 = vmax.f32 %v486_v41, 0.0 }
 0x2ea   :  { %543 = vmax.xlane.f32.xlu2 %v515_v57 }
 0x2ed   :  { %v495_v55 = vpop.f32.mrf.mxu2 }
 0x2ee   :  { %v496_v54 = vadd.f32 %v495_v55, %v377_v48  ;;  %v510_v48 = vmax.f32 %v481_v43, 0.0  ;;  %v322_v55 = vpop.permute.xlu2 %321 }
 0x2ef   :  { %v469_v59 = vadd.f32 %v468_v31, %v322_v55 }
 0x2f0   :  { %v516_v52 = vmax.f32 %v496_v54, 0.0  ;;  %v342_v54 = vpop.permute.xlu1 %341 }
 0x2f2   :  { %545 = vmax.xlane.f32.xlu2 %v516_v52  ;;  %v507_v52 = vmax.f32 %v474_v37, 0.0 }
 0x2f5   :  { %v498_v53 = vpop.f32.mrf.mxu2 }
 0x2f6   :  { %v499_v61 = vadd.f32 %v498_v53, %v382_v44  ;;  %v491_v44 = vadd.f32 %v490_v45, %v367_v42  ;;  %v505_v53 = vmax.f32 %v469_v59, 0.0 }
 0x2f8   :  { %v517_v40 = vmax.f32 %v499_v61, 0.0  ;;  %v514_v51 = vmax.f32 %v491_v44, 0.0  ;;  %v479_v61 = vadd.f32 %v478_v35, %v342_v54 }
 0x2fa   :  { %547 = vmax.xlane.f32.xlu0 %v517_v40  ;;  %535 = vmax.xlane.f32.xlu2 %v511_v26  ;;  %v509_v26 = vmax.f32 %v479_v61, 0.0  ;;  %v337_v40 = vpop.permute.xlu1 %336  ;;  %v2021_v61 = vld [vmem:[%s2765_s1 + $0x80] sm:$0xff] }
 0x2fb   :  { %v476_v5 = vadd.f32 %v2421_v34, %v337_v40 }
 0x2fd   :  { %v500_v49 = vpop.f32.mrf.mxu2  ;;  %v508_v31 = vmax.f32 %v476_v5, 0.0 }
 0x2fe   :  { %v501_v50 = vadd.f32 %v500_v49, %v387_v38  ;;  %v317_v38 = vpop.permute.xlu2 %316 }
 0x2ff   :  { %v466_v4 = vadd.f32 %v2419_v30, %v317_v38  ;;  %v2769_v30 = vmov 2   ;;  %v2020_v38 = vld [vmem:[%s2765_s1 + $0x78] sm:$0xff] }
 0x300   :  { %v518_v57 = vmax.f32 %v501_v50, 0.0 }
 0x301   :  { %v504_v41 = vmax.f32 %v466_v4, 0.0  ;;  %v1882_v4 = vld [vmem:[%s2764_s0 + $0x4] sm:$0x7] }
 0x302   :  { %549 = vmax.xlane.f32.xlu1 %v518_v57  ;;  %537 = vmax.xlane.f32.xlu0 %v512_v56  ;;  %v312_v33 = vpop.permute.xlu1 %311  ;;  %v897_v40 = vperm.slane %v1882_v4, 0 }
 0x303   :  { %533 = vmax.xlane.f32.xlu2 %v510_v48  ;;  %v464_v45 = vadd.f32 %v2417_v27, %v312_v33 }
 0x305   :  { %v503_v42 = vmax.f32 %v464_v45, 0.0 }
 0x30a   :  { %541 = vmax.xlane.f32.xlu1 %v514_v51  ;;  %527 = vmax.xlane.f32.xlu0 %v507_v52 }
 0x30b   :  { %523 = vmax.xlane.f32.xlu2 %v505_v53 }
 0x312   :  { %531 = vmax.xlane.f32.xlu1 %v509_v26  ;;  %525 = vmax.xlane.f32.xlu0 %v506_v25 }
 0x313   :  { %521 = vmax.xlane.f32.xlu2 %v504_v41 }
 0x31a   :  { %529 = vmax.xlane.f32.xlu1 %v508_v31  ;;  %v920_v31 = vperm.slane %v1882_v4, 1 }
 0x322   :  { %519 = vmax.xlane.f32.xlu1 %v503_v42 }
 0x326   :  { %2092 = vperm.xlu0 %2070, %v2182_v6  }
 0x32b   :  { %907 = vperm.xlu2 %2089, %v2173_v0  }
 0x32e   :  { %2096 = vset.pattern.permute.xlu0 %v2146_v7 }
 0x32f   :  { %2098 = vperm.xlu0 %2096, %v2182_v6  }
 0x337   :  { %2109 = vset.pattern.permute.xlu0 %v2144_v2 }
 0x33b   :  { %902 = vperm.xlu1 %2090, %v2190_v8  }
 0x343   :  { %2102 = vset.pattern.permute.xlu1 %v2769_v30 }
 0x344   :  { %2104 = vperm.xlu1 %2102, %v2182_v6  }
 0x34c   :  { %2108 = vset.pattern.permute.xlu1 %v2144_v2 }
 0x34d   :  { %v540_v32 = vpop.xlane.xlu0 %539 }
 0x35d   :  { %v544_v27 = vpop.xlane.xlu2 %543 }
 0x365   :  { %v546_v34 = vpop.xlane.xlu2 %545 }
 0x366   :  { %v565_v7 = vpack.c.bf16 %v546_v34, %v544_v27 }
 0x36d   :  { %v548_v35 = vpop.xlane.xlu0 %547  ;;  %v536_v49 = vpop.xlane.xlu2 %535 }
 0x375   :  { %v550_v43 = vpop.xlane.xlu1 %549  ;;  %v538_v50 = vpop.xlane.xlu0 %537 }
 0x376   :  { %v566_v0 = vpack.c.bf16 %v550_v43, %v548_v35  ;;  %v534_v8 = vpop.xlane.xlu2 %533  ;;  %v563_v48 = vpack.c.bf16 %v538_v50, %v536_v49  ;;  %v933_v35 = vperm.slane %v1882_v4, 2  ;;  %v2453_v4 = vld [vmem:[%s2766_s2 + $0x120] sm:$0xff] }
 0x378   :  { %599 = vmatpush.bf16.msrb.mxu3 %v566_v0 }
 0x37c   :  { %600 = vmatpush.bf16.msrb.mxu3 %v565_v7 }
 0x37d   :  { %v542_v56 = vpop.xlane.xlu1 %541  ;;  %v528_v6 = vpop.xlane.xlu0 %527 }
 0x37e   :  { %v564_v57 = vpack.c.bf16 %v542_v56, %v540_v32  ;;  %v524_v37 = vpop.xlane.xlu2 %523  ;;  %v2022_v56 = vld [vmem:[%s2765_s1 + $0x88] sm:$0xff] }
 0x380   :  { %601 = vmatpush.bf16.msrb.mxu3 %v564_v57 }
 0x384   :  { %602 = vmatpush.bf16.msrb.mxu3 %v563_v48 }
 0x385   :  { %v532_v55 = vpop.xlane.xlu1 %531  ;;  %v526_v54 = vpop.xlane.xlu0 %525 }
 0x386   :  { %v562_v2 = vpack.c.bf16 %v534_v8, %v532_v55  ;;  %v560_v52 = vpack.c.bf16 %v526_v54, %v524_v37  ;;  %v522_v51 = vpop.xlane.xlu2 %521  ;;  %v2023_v54 = vld [vmem:[%s2765_s1 + $0x90] sm:$0xff] }
 0x388   :  { %603 = vmatpush.bf16.msrb.mxu3 %v562_v2 }
 0x38d   :  { %v530_v44 = vpop.xlane.xlu1 %529 }
 0x38e   :  { %v561_v59 = vpack.c.bf16 %v530_v44, %v528_v6  ;;  %v908_v43 = vpop.permute.xlu2 %907 }
 0x390   :  { %604 = vmatpush.bf16.msrb.mxu3 %v561_v59 }
 0x394   :  { %605 = vmatpush.bf16.msrb.mxu3 %v560_v52 }
 0x395   :  { %v520_v53 = vpop.xlane.xlu1 %519 }
 0x396   :  { %v559_v36 = vpack.c.bf16 %v522_v51, %v520_v53 }
 0x398   :  { %606 = vmatpush.bf16.msrb.mxu3 %v559_v36  ;;  %v2093_v39 = vpop.permute.xlu0 %2092 }
 0x399   :  { %v2095_v41 = vunpack.i.h.bf16 %v2093_v39  ;;  %v2094_v5 = vunpack.i.l.bf16 %v2093_v39 }
 0x39b   :  { %607 = vmatmul.bf16.vlgmr.msrb.gmra.mxu3 %v2020_v38  ;;  %v899_v42 = vmul.f32 %v2095_v41, %v897_v40  ;;  %v898_v30 = vmul.f32 %v2094_v5, %v897_v40  ;;  %v2469_v41 = vld [vmem:[%s2766_s2 + $0x110] sm:$0xff] }
 0x39d   :  { %v911_v49 = vadd.f32 %v908_v43, %v899_v42 }
 0x3a1   :  { %v2099_v26 = vpop.permute.xlu0 %2098 }
 0x3a2   :  { %v2101_v33 = vunpack.i.h.bf16 %v2099_v26  ;;  %v2100_v45 = vunpack.i.l.bf16 %v2099_v26  ;;  %v2463_v26 = vld [vmem:[%s2766_s2 + $0x128] sm:$0xff] }
 0x3a4   :  { %v922_v27 = vmul.f32 %v2101_v33, %v920_v31  ;;  %v921_v32 = vmul.f32 %v2100_v45, %v920_v31  ;;  %v2476_v45 = vld [vmem:[%s2766_s2 + $0x108] sm:$0xff] }
 0x3a6   :  { %v924_v57 = vadd.f32 %v922_v27, %v911_v49 }
 0x3ab   :  { %612 = vmatmul.bf16.gmra.mxu3 %v2021_v61 }
 0x3ad   :  { %v903_v25 = vpop.permute.xlu1 %902 }
 0x3ae   :  { %v910_v34 = vadd.f32 %v903_v25, %v898_v30  ;;  %v2458_v25 = vld [vmem:[%s2766_s2 + $0x118] sm:$0xff] }
 0x3b0   :  { %v923_v8 = vadd.f32 %v921_v32, %v910_v34  ;;  %v2482_v32 = vld [vmem:[%s2766_s2 + $0x100] sm:$0xff] }
 0x3b6   :  { %v2105_v0 = vpop.permute.xlu1 %2104 }
 0x3b7   :  { %v2107_v7 = vunpack.i.h.bf16 %v2105_v0  ;;  %v2106_v50 = vunpack.i.l.bf16 %v2105_v0  ;;  %v2488_v0 = vld [vmem:[%s2766_s2 + $0xf8] sm:$0xff] }
 0x3b9   :  { %v935_v48 = vmul.f32 %v2107_v7, %v933_v35  ;;  %v934_v6 = vmul.f32 %v2106_v50, %v933_v35  ;;  %v2494_v50 = vld [vmem:[%s2766_s2 + $0xf0] sm:$0xff] }
 0x3bb   :  { %v937_v55 = vadd.f32 %v935_v48, %v924_v57  ;;  %v936_v2 = vadd.f32 %v934_v6, %v923_v8  ;;  %617 = vmatmul.bf16.gmra.mxu3 %v2022_v56 }
 0x3bd   :  { %v939_v37 = vmax.f32 %v937_v55, 0.0  ;;  %v938_v44 = vmax.f32 %v936_v2, 0.0 }
 0x3bf   :  { %v944_v59 = vpack.c.bf16 %v939_v37, %v938_v44 }
 0x3c1   :  { %992 = vmatpush.bf16.msra.mxu1 %v944_v59  ;;  %v2024_v59 = vld [vmem:[%s2765_s1 + $0x98] sm:$0xff] }
 0x3cb   :  { %622 = vmatmul.bf16.gmra.mxu3 %v2023_v54  ;;  %v2025_v54 = vld [vmem:[%s2765_s1 + $0xa0] sm:$0xff] }
 0x41e   :  { %v608_v52 = vpop.f32.mrf.mxu3 }
 0x41f   :  { %v609_v48 = vadd.f32 %v608_v52, %v2494_v50 }
 0x421   :  { %v628_v37 = vmax.f32 %v609_v48, 0.0  ;;  %v2031_v48 = vld [vmem:[%s2765_s1 + $0x8] sm:$0xff] }
 0x426   :  { %v610_v51 = vpop.f32.mrf.mxu3 }
 0x427   :  { %v611_v56 = vadd.f32 %v610_v51, %v2488_v0 }
 0x429   :  { %v629_v55 = vmax.f32 %v611_v56, 0.0  ;;  %v2026_v56 = vld [vmem:[%s2765_s1 + $0xa8] sm:$0xff] }
 0x42b   :  { %v640_v44 = vpack.c.bf16 %v629_v55, %v628_v37  ;;  %v2557_v55 = vld [vmem:[%s2766_s2 + $0x150] sm:$0xff] }
 0x42e   :  { %v613_v53 = vpop.f32.mrf.mxu3 }
 0x42f   :  { %v614_v49 = vadd.f32 %v613_v53, %v2482_v32 }
 0x431   :  { %v630_v6 = vmax.f32 %v614_v49, 0.0 }
 0x436   :  { %v615_v36 = vpop.f32.mrf.mxu3 }
 0x437   :  { %v616_v34 = vadd.f32 %v615_v36, %v2476_v45  ;;  %v2509_v36 = vld [vmem:[%s2766_s2 + $0x140] sm:$0xff] }
 0x439   :  { %v631_v57 = vmax.f32 %v616_v34, 0.0 }
 0x43b   :  { %v641_v2 = vpack.c.bf16 %v631_v57, %v630_v6  ;;  %v2029_v57 = vld [vmem:[%s2765_s1 + $0xc0] sm:$0xff]  ;;  %v2032_v6 = vld [vmem:[%s2765_s1 + $0x10] sm:$0xff] }
 0x43e   :  { %v618_v38 = vpop.f32.mrf.mxu3 }
 0x43f   :  { %v619_v42 = vadd.f32 %v618_v38, %v2469_v41  ;;  %v2514_v38 = vld [vmem:[%s2766_s2 + $0x138] sm:$0xff] }
 0x441   :  { %v632_v7 = vmax.f32 %v619_v42, 0.0 }
 0x446   :  { %v620_v39 = vpop.f32.mrf.mxu3 }
 0x447   :  { %v621_v31 = vadd.f32 %v620_v39, %v2458_v25  ;;  %v2519_v39 = vld [vmem:[%s2766_s2 + $0x148] sm:$0xff] }
 0x449   :  { %v633_v35 = vmax.f32 %v621_v31, 0.0 }
 0x44b   :  { %v642_v8 = vpack.c.bf16 %v633_v35, %v632_v7 }
 0x44e   :  { %v623_v61 = vpop.f32.mrf.mxu3 }
 0x44f   :  { %v624_v40 = vadd.f32 %v623_v61, %v2453_v4  ;;  %v2028_v61 = vld [vmem:[%s2765_s1 + $0xb8] sm:$0xff] }
 0x450   :  { %1873 = vmatmul.msk.bf16.vlgmr.msrb.gmra.mxu1 %vm223_vm1, %v2028_v61 }
 0x451   :  { %v634_v30 = vmax.f32 %v624_v40, 0.0 }
 0x456   :  { %v625_v5 = vpop.f32.mrf.mxu3 }
 0x457   :  { %v626_v33 = vadd.f32 %v625_v5, %v2463_v26  ;;  %v2528_v5 = vld [vmem:[%s2766_s2 + $0x130] sm:$0xff] }
 0x459   :  { %v635_v27 = vmax.f32 %v626_v33, 0.0 }
 0x45b   :  { %v643_v43 = vpack.c.bf16 %v635_v27, %v634_v30 }
 0x45d   :  { %668 = vmatpush.bf16.msra.mxu0 %v643_v43 }
 0x460   :  { %1874 = vmatmul.msk.bf16.gmra.mxu1 %vm223_vm1, %v2029_v57 }
 0x461   :  { %669 = vmatpush.bf16.msra.mxu0 %v642_v8  ;;  %v2027_v8 = vld [vmem:[%s2765_s1 + $0xb0] sm:$0xff] }
 0x465   :  { %670 = vmatpush.bf16.msra.mxu0 %v641_v2 }
 0x469   :  { %671 = vmatpush.bf16.msra.mxu0 %v640_v44 }
 0x46c   :  { %1853 = vmatmul.msk.bf16.vlgmr.msra.gmra.mxu0 %vm429_vm2, %v2024_v59  ;;  %v2564_v59 = vld [vmem:[%s2766_s2 + $0x160] sm:$0xff] }
 0x470   :  { %1891 = vmatmul.msk.bf16.vlgmr.msra.gmra.mxu1 %vm115_vm0, %v2031_v48 }
 0x47c   :  { %1854 = vmatmul.msk.bf16.gmra.mxu0 %vm429_vm2, %v2025_v54 }
 0x480   :  { %1892 = vmatmul.msk.bf16.gmra.mxu1 %vm115_vm0, %v2032_v6 }
 0x4e9   :  { %v673_v52 = vpop.f32.mrf.mxu0 }
 0x4ea   :  { %v674_v30 = vadd.f32 %v673_v52, %v2528_v5 }
 0x4ec   :  { %v683_v49 = vmax.f32 %v674_v30, 0.0 }
 0x4f1   :  { %v675_v51 = vpop.f32.mrf.mxu0 }
 0x4f2   :  { %v676_v33 = vadd.f32 %v675_v51, %v2514_v38  ;;  %v2571_v51 = vld [vmem:[%s2766_s2 + $0x158] sm:$0xff] }
 0x4f4   :  { %v684_v35 = vmax.f32 %v676_v33, 0.0 }
 0x4f6   :  { %v691_v7 = vpack.c.bf16 %v684_v35, %v683_v49 }
 0x4f9   :  { %v678_v53 = vpop.f32.mrf.mxu0 }
 0x4fa   :  { %v679_v40 = vadd.f32 %v678_v53, %v2509_v36 }
 0x4fc   :  { %v685_v27 = vmax.f32 %v679_v40, 0.0 }
 0x501   :  { %v680_v31 = vpop.f32.mrf.mxu0 }
 0x502   :  { %v681_v42 = vadd.f32 %v680_v31, %v2519_v39 }
 0x504   :  { %v686_v34 = vmax.f32 %v681_v42, 0.0 }
 0x506   :  { %v692_v43 = vpack.c.bf16 %v686_v34, %v685_v27  ;;  %v2030_v34 = vld [vmem:[%s2765_s1 + $0xc8] sm:$0xff] }
 0x508   :  { %719 = vmatpush.bf16.msrb.mxu0 %v692_v43 }
 0x50c   :  { %720 = vmatpush.bf16.msrb.mxu0 %v691_v7 }
 0x50f   :  { %1863 = vmatmul.msk.bf16.vlgmr.msrb.gmra.mxu0 %vm223_vm1, %v2026_v56 }
 0x51f   :  { %1864 = vmatmul.msk.bf16.gmra.mxu0 %vm223_vm1, %v2027_v8 }
 0x58c   :  { %v722_v2 = vpop.f32.mrf.mxu0 }
 0x58d   :  { %v723_v37 = vadd.f32 %v722_v2, %v2557_v55 }
 0x58f   :  { %738 = vperm.xlu0 %2109, %v723_v37   ;;  %v2033_v37 = vld [vmem:[%s2765_s1 + $0x18] sm:$0xff] }
 0x594   :  { %v724_v44 = vpop.f32.mrf.mxu0 }
 0x595   :  { %v725_v61 = vadd.f32 %v724_v44, %v2571_v51  ;;  %v2034_v44 = vld [vmem:[%s2765_s1 + $0x20] sm:$0xff] }
 0x597   :  { %956 = vperm.xlu0 %2109, %v2265_v21   ;;  %v2576_v21 = vld [vmem:[%s2766_s2 + $0x168] sm:$0xff] }
 0x59c   :  { %v727_v54 = vpop.f32.mrf.mxu0 }
 0x59d   :  { %v728_v52 = vadd.f32 %v727_v54, %v2564_v59  ;;  %v2035_v54 = vld [vmem:[%s2765_s1 + $0x28] sm:$0xff] }
 0x59f   :  { %748 = vperm.xlu2 %2089, %v728_v52   ;;  %1058 = vperm.xlu0 %2109, %v2205_v10   ;;  %v2587_v10 = vld [vmem:[%s2766_s2 + $0x190] sm:$0xff] }
 0x5a0   :  { %v2036_v52 = vld [vmem:[%s2765_s1 + $0x30] sm:$0xff] }
 0x5a4   :  { %v729_v53 = vpop.f32.mrf.mxu0 }
 0x5a5   :  { %v730_v40 = vadd.f32 %v729_v53, %v2576_v21 }
 0x5a7   :  { %753 = vperm.xlu1 %2108, %v730_v40   ;;  %743 = vperm.xlu2 %2089, %v725_v61  }
 0x5a8   :  { %1053 = vperm.xlu0 %2109, %v2211_v11   ;;  %v2595_v11 = vld [vmem:[%s2766_s2 + $0x198] sm:$0xff] }
 0x5af   :  { %961 = vperm.xlu1 %2108, %v2253_v19   ;;  %966 = vperm.xlu2 %2089, %v2198_v9   ;;  %v1159_v9 = vld [vmem:[%s2766_s2 + $0x90] sm:$0xff] }
 0x5b0   :  { %1028 = vperm.xlu0 %2109, %v2217_v12   ;;  %v1158_v12 = vld [vmem:[%s2766_s2 + $0x88] sm:$0xff] }
 0x5b7   :  { %951 = vperm.xlu1 %2108, %v2247_v18   ;;  %803 = vperm.xlu2 %2089, %v2587_v10  }
 0x5b8   :  { %1248 = vperm.xlu0 %2109, %v2223_v13   ;;  %v781_v13 = vpop.f32.mrf.mxu1 }
 0x5bf   :  { %808 = vperm.xlu1 %2108, %v2595_v11   ;;  %1063 = vperm.xlu2 %2089, %v2258_v20  }
 0x5c0   :  { %1223 = vperm.xlu0 %2109, %v2229_v14   ;;  %v783_v14 = vpop.f32.mrf.mxu1 }
 0x5c7   :  { %1048 = vperm.xlu1 %2108, %v2277_v23   ;;  %1038 = vperm.xlu2 %2089, %v2270_v22  }
 0x5c8   :  { %1218 = vperm.xlu0 %2109, %v2235_v15   ;;  %v786_v15 = vpop.f32.mrf.mxu1 }
 0x5cf   :  { %1043 = vperm.xlu1 %2108, %v2292_v28   ;;  %1033 = vperm.xlu2 %2089, %v2282_v24  }
 0x5d0   :  { %1193 = vperm.xlu0 %2109, %v1159_v9   ;;  %v788_v18 = vpop.f32.mrf.mxu1 }
 0x5d7   :  { %1243 = vperm.xlu1 %2108, %v2304_v46   ;;  %1233 = vperm.xlu2 %2089, %v2297_v29  }
 0x5d8   :  { %1188 = vperm.xlu0 %2109, %v1158_v12   ;;  %v994_v19 = vpop.f32.mrf.mxu1 }
 0x5df   :  { %1238 = vperm.xlu1 %2108, %v2316_v58   ;;  %1228 = vperm.xlu2 %2089, %v2309_v47  }
 0x5e0   :  { %v996_v22 = vpop.f32.mrf.mxu1 }
 0x5e7   :  { %1213 = vperm.xlu1 %2108, %v2332_v62   ;;  %1203 = vperm.xlu2 %2089, %v2321_v60  }
 0x5e8   :  { %v999_v24 = vpop.f32.mrf.mxu1 }
 0x5ef   :  { %1208 = vperm.xlu1 %2108, %v2344_v1   ;;  %1198 = vperm.xlu2 %2089, %v2337_v63  }
 0x5f0   :  { %v1001_v31 = vpop.f32.mrf.mxu1 }
 0x5f7   :  { %1183 = vperm.xlu1 %2108, %v2360_v16   ;;  %1173 = vperm.xlu2 %2089, %v2349_v3  }
 0x5f9   :  { %v749_v20 = vpop.permute.xlu2 %748 }
 0x5fa   :  { %v787_v29 = vadd.f32 %v786_v15, %v749_v20 }
 0x5fc   :  { %v793_v62 = vmax.f32 %v787_v29, 0.0 }
 0x5ff   :  { %1178 = vperm.xlu1 %2108, %v2366_v17  }
 0x601   :  { %v744_v23 = vpop.permute.xlu2 %743  ;;  %v739_v28 = vpop.permute.xlu0 %738 }
 0x602   :  { %v784_v47 = vadd.f32 %v783_v14, %v744_v23  ;;  %v782_v58 = vadd.f32 %v781_v13, %v739_v28  ;;  %v835_v23 = vld [vmem:[%s2765_s1 + $0xd0] sm:$0x1] }
 0x604   :  { %v792_v16 = vmax.f32 %v784_v47, 0.0  ;;  %v791_v33 = vmax.f32 %v782_v58, 0.0 }
 0x606   :  { %v797_v30 = vpack.c.bf16 %v792_v16, %v791_v33 }
 0x609   :  { %v967_v1 = vpop.permute.xlu2 %966  ;;  %v957_v7 = vpop.permute.xlu0 %956 }
 0x60a   :  { %v1002_v42 = vadd.f32 %v1001_v31, %v967_v1  ;;  %v997_v56 = vadd.f32 %v996_v22, %v957_v7 }
 0x60c   :  { %v1007_v35 = vmax.f32 %v1002_v42, 0.0  ;;  %v1005_v48 = vmax.f32 %v997_v56, 0.0 }
 0x611   :  { %v804_v61 = vpop.permute.xlu2 %803  ;;  %v1059_v47 = vpop.permute.xlu0 %1058 }
 0x619   :  { %v754_v46 = vpop.permute.xlu1 %753 }
 0x61a   :  { %v789_v60 = vadd.f32 %v788_v18, %v754_v46  ;;  %v1064_v46 = vpop.permute.xlu2 %1063  ;;  %v1054_v1 = vpop.permute.xlu0 %1053 }
 0x61c   :  { %v794_v63 = vmax.f32 %v789_v60, 0.0 }
 0x61e   :  { %v798_v3 = vpack.c.bf16 %v794_v63, %v793_v62 }
 0x620   :  { %825 = vmatpush.bf16.msra.mxu3 %v798_v3 }
 0x621   :  { %v962_v17 = vpop.permute.xlu1 %961 }
 0x622   :  { %v1000_v27 = vadd.f32 %v999_v24, %v962_v17  ;;  %v1039_v62 = vpop.permute.xlu2 %1038 }
 0x624   :  { %v1006_v43 = vmax.f32 %v1000_v27, 0.0  ;;  %826 = vmatpush.bf16.msra.mxu3 %v797_v30 }
 0x626   :  { %v1017_v49 = vpack.c.bf16 %v1007_v35, %v1006_v43 }
 0x627   :  { %1879 = vmatmul.msk.bf16.vlgmr.msra.gmra.mxu3 %vm223_vm1, %v2030_v34 }
 0x628   :  { %1104 = vmatpush.bf16.msrb.mxu3 %v1017_v49 }
 0x629   :  { %v952_v57 = vpop.permute.xlu1 %951 }
 0x62a   :  { %v995_v8 = vadd.f32 %v994_v19, %v952_v57  ;;  %v1034_v7 = vpop.permute.xlu2 %1033 }
 0x62c   :  { %v1004_v6 = vmax.f32 %v995_v8, 0.0 }
 0x62e   :  { %v1016_v2 = vpack.c.bf16 %v1005_v48, %v1004_v6  ;;  %v1029_v48 = vpop.permute.xlu0 %1028 }
 0x630   :  { %1105 = vmatpush.bf16.msrb.mxu3 %v1016_v2 }
 0x631   :  { %v809_v9 = vpop.permute.xlu1 %808 }
 0x634   :  { %1639 = vmatpush.bf16.msra.mxu3 %v1017_v49 }
 0x637   :  { %1909 = vmatmul.msk.bf16.vlgmr.msrb.gmra.mxu3 %vm223_vm1, %v2033_v37 }
 0x638   :  { %1640 = vmatpush.bf16.msra.mxu3 %v1016_v2 }
 0x639   :  { %v1049_v60 = vpop.permute.xlu1 %1048 }
 0x641   :  { %v1044_v30 = vpop.permute.xlu1 %1043 }
 0x647   :  { %1910 = vmatmul.msk.bf16.gmra.mxu3 %vm223_vm1, %v2034_v44 }
 0x657   :  { %1911 = vmatmul.msk.bf16.gmra.mxu3 %vm223_vm1, %v2035_v54 }
 0x667   :  { %1912 = vmatmul.msk.bf16.gmra.mxu3 %vm223_vm1, %v2036_v52 }
 0x6aa   :  { %v828_v53 = vpop.f32.mrf.mxu3 }
 0x6ab   :  { %v829_v40 = vadd.f32 %v828_v53, %v804_v61  ;;  %v2037_v53 = vld [vmem:[%s2765_s1 + $0x38] sm:$0xff]  ;;  %v2038_v61 = vld [vmem:[%s2765_s1 + $0x40] sm:$0xff] }
 0x6ad   :  { %v833_v14 = vmax.f32 %v829_v40, 0.0  ;;  %v2039_v40 = vld [vmem:[%s2765_s1 + $0x48] sm:$0xff] }
 0x6b2   :  { %v830_v12 = vpop.f32.mrf.mxu3 }
 0x6b3   :  { %v831_v13 = vadd.f32 %v830_v12, %v809_v9  ;;  %v2040_v9 = vld [vmem:[%s2765_s1 + $0x50] sm:$0xff]  ;;  %v2041_v12 = vld [vmem:[%s2765_s1 + $0x58] sm:$0xff] }
 0x6b5   :  { %v834_v15 = vmax.f32 %v831_v13, 0.0 }
 0x6b7   :  { %v836_v18 = vpack.c.bf16 %v834_v15, %v833_v14  ;;  %v2042_v15 = vld [vmem:[%s2765_s1 + $0x60] sm:$0xff] }
 0x6b9   :  { %853 = vmatpush.bf16.msra.mxu0 %v836_v18  ;;  %v2043_v18 = vld [vmem:[%s2765_s1 + $0x68] sm:$0xff] }
 0x6ba   :  { %v1107_v19 = vpop.f32.mrf.mxu3 }
 0x6bb   :  { %v1108_v6 = vadd.f32 %v1107_v19, %v1029_v48  ;;  %v2044_v19 = vld [vmem:[%s2765_s1 + $0x70] sm:$0xff] }
 0x6bc   :  { %1880 = vmatmul.msk.bf16.vlgmr.msra.gmra.mxu0 %vm115_vm0, %v835_v23 }
 0x6bd   :  { %v1127_v54 = vmax.f32 %v1108_v6, 0.0 }
 0x6c2   :  { %v1109_v20 = vpop.f32.mrf.mxu3 }
 0x6c3   :  { %v1110_v56 = vadd.f32 %v1109_v20, %v1034_v7 }
 0x6c5   :  { %v1128_v37 = vmax.f32 %v1110_v56, 0.0 }
 0x6c7   :  { %v1151_v52 = vpack.c.bf16 %v1128_v37, %v1127_v54 }
 0x6ca   :  { %v1112_v22 = vpop.f32.mrf.mxu3 }
 0x6cb   :  { %v1113_v43 = vadd.f32 %v1112_v22, %v1039_v62 }
 0x6cd   :  { %v1129_v2 = vmax.f32 %v1113_v43, 0.0 }
 0x6d2   :  { %v1114_v24 = vpop.f32.mrf.mxu3 }
 0x6d3   :  { %v1115_v27 = vadd.f32 %v1114_v24, %v1044_v30 }
 0x6d5   :  { %v1130_v57 = vmax.f32 %v1115_v27, 0.0  ;;  %v1244_v27 = vpop.permute.xlu1 %1243 }
 0x6d7   :  { %v1152_v44 = vpack.c.bf16 %v1130_v57, %v1129_v2 }
 0x6da   :  { %v1117_v28 = vpop.f32.mrf.mxu3 }
 0x6db   :  { %v1118_v3 = vadd.f32 %v1117_v28, %v1049_v60  ;;  %v1249_v60 = vpop.permute.xlu0 %1248 }
 0x6dd   :  { %v1131_v49 = vmax.f32 %v1118_v3, 0.0  ;;  %v1239_v7 = vpop.permute.xlu1 %1238 }
 0x6e2   :  { %v1119_v29 = vpop.f32.mrf.mxu3 }
 0x6e3   :  { %v1120_v16 = vadd.f32 %v1119_v29, %v1054_v1  ;;  %v1224_v1 = vpop.permute.xlu0 %1223 }
 0x6e5   :  { %v1132_v34 = vmax.f32 %v1120_v16, 0.0 }
 0x6e7   :  { %v1153_v8 = vpack.c.bf16 %v1132_v34, %v1131_v49 }
 0x6ea   :  { %v1122_v58 = vpop.f32.mrf.mxu3 }
 0x6eb   :  { %v1123_v63 = vadd.f32 %v1122_v58, %v1059_v47 }
 0x6ed   :  { %v1133_v42 = vmax.f32 %v1123_v63, 0.0  ;;  %v1234_v63 = vpop.permute.xlu2 %1233 }
 0x6f2   :  { %v1124_v31 = vpop.f32.mrf.mxu3 }
 0x6f3   :  { %v1125_v33 = vadd.f32 %v1124_v31, %v1064_v46 }
 0x6f5   :  { %v1134_v17 = vmax.f32 %v1125_v33, 0.0  ;;  %v1229_v3 = vpop.permute.xlu2 %1228 }
 0x6f7   :  { %v1154_v35 = vpack.c.bf16 %v1134_v17, %v1133_v42 }
 0x6f9   :  { %1319 = vmatpush.bf16.msrb.mxu0 %v1154_v35 }
 0x6fd   :  { %1320 = vmatpush.bf16.msrb.mxu0 %v1153_v8  ;;  %v1204_v43 = vpop.permute.xlu2 %1203 }
 0x701   :  { %1321 = vmatpush.bf16.msrb.mxu0 %v1152_v44  ;;  %v1214_v44 = vpop.permute.xlu1 %1213 }
 0x705   :  { %1322 = vmatpush.bf16.msrb.mxu0 %v1151_v52  ;;  %v1199_v2 = vpop.permute.xlu2 %1198 }
 0x708   :  { %1945 = vmatmul.msk.bf16.vlgmr.msrb.gmra.mxu0 %vm429_vm2, %v2037_v53 }
 0x718   :  { %1946 = vmatmul.msk.bf16.gmra.mxu0 %vm429_vm2, %v2038_v61 }
 0x728   :  { %1947 = vmatmul.msk.bf16.gmra.mxu0 %vm429_vm2, %v2039_v40  ;;  %v1174_v40 = vpop.permute.xlu2 %1173 }
 0x738   :  { %1948 = vmatmul.msk.bf16.gmra.mxu0 %vm429_vm2, %v2040_v9 }
 0x739   :  { %v2666_v13 = vpop.f32.mrf.mxu0 }
 0x741   :  { %v857_v14 = vpop.f32.mrf.mxu0 }
 0x748   :  { %1949 = vmatmul.msk.bf16.gmra.mxu0 %vm429_vm2, %v2041_v12 }
 0x758   :  { %1950 = vmatmul.msk.bf16.gmra.mxu0 %vm429_vm2, %v2042_v15 }
 0x768   :  { %1951 = vmatmul.msk.bf16.gmra.mxu0 %vm429_vm2, %v2043_v18  ;;  %v1219_v18 = vpop.permute.xlu0 %1218 }
 0x778   :  { %1952 = vmatmul.msk.bf16.gmra.mxu0 %vm429_vm2, %v2044_v19  ;;  %v1209_v19 = vpop.permute.xlu1 %1208 }
 0x785   :  { %v1324_v20 = vpop.f32.mrf.mxu0 }
 0x786   :  { %v1325_v12 = vadd.f32 %v1324_v20, %v1174_v40 }
 0x78d   :  { %v2680_v22 = vpop.f32.mrf.mxu0 }
 0x795   :  { %v2682_v23 = vpop.f32.mrf.mxu0 }
 0x79d   :  { %v2684_v24 = vpop.f32.mrf.mxu0 }
 0x7a5   :  { %v2686_v28 = vpop.f32.mrf.mxu0 }
 0x7ad   :  { %v1336_v29 = vpop.f32.mrf.mxu0 }
 0x7ae   :  { %v1337_v37 = vadd.f32 %v1336_v29, %v1199_v2 }
 0x7b0   :  { %v1369_v53 = vmax.f32 %v1337_v37, 0.0 }
 0x7b5   :  { %v1339_v46 = vpop.f32.mrf.mxu0 }
 0x7b6   :  { %v1340_v56 = vadd.f32 %v1339_v46, %v1204_v43 }
 0x7b8   :  { %v1370_v48 = vmax.f32 %v1340_v56, 0.0 }
 0x7bd   :  { %v1341_v47 = vpop.f32.mrf.mxu0 }
 0x7be   :  { %v1342_v29 = vadd.f32 %v1341_v47, %v1209_v19  ;;  %v2046_v19 = vld [vmem:[%s2765_s1 + $0x80] sm:$0xff] }
 0x7c5   :  { %v1344_v58 = vpop.f32.mrf.mxu0 }
 0x7c6   :  { %v1345_v9 = vadd.f32 %v1344_v58, %v1214_v44 }
 0x7c8   :  { %v1372_v46 = vmax.f32 %v1345_v9, 0.0 }
 0x7cd   :  { %v1346_v62 = vpop.f32.mrf.mxu0 }
 0x7d5   :  { %v1349_v31 = vpop.f32.mrf.mxu0 }
 0x7d6   :  { %v1350_v16 = vadd.f32 %v1349_v31, %v1224_v1  ;;  %v1364_v1 = vmax.f32 %v1325_v12, 0.0  ;;  %v1347_v31 = vadd.f32 %v1346_v62, %v1219_v18  ;;  %v2045_v18 = vld [vmem:[%s2765_s1 + $0x78] sm:$0xff] }
 0x7d8   :  { %v1374_v33 = vmax.f32 %v1350_v16, 0.0  ;;  %v1371_v16 = vmax.f32 %v1342_v29, 0.0 }
 0x7da   :  { %1400 = vmax.xlane.f32.xlu2 %v1374_v33  ;;  %v1373_v33 = vmax.f32 %v1347_v31, 0.0 }
 0x7dd   :  { %v1351_v42 = vpop.f32.mrf.mxu0 }
 0x7de   :  { %v1352_v17 = vadd.f32 %v1351_v42, %v1229_v3  ;;  %v1194_v3 = vpop.permute.xlu0 %1193  ;;  %v1184_v42 = vpop.permute.xlu1 %1183 }
 0x7df   :  { %v1330_v20 = vadd.f32 %v2682_v23, %v1184_v42  ;;  %v1335_v58 = vadd.f32 %v2686_v28, %v1194_v3 }
 0x7e0   :  { %v1375_v30 = vmax.f32 %v1352_v17, 0.0 }
 0x7e1   :  { %v1368_v17 = vmax.f32 %v1335_v58, 0.0 }
 0x7e2   :  { %1402 = vmax.xlane.f32.xlu1 %v1375_v30 }
 0x7e5   :  { %v1354_v34 = vpop.f32.mrf.mxu0 }
 0x7e6   :  { %v1355_v35 = vadd.f32 %v1354_v34, %v1234_v63  ;;  %v1189_v30 = vpop.permute.xlu0 %1188 }
 0x7e7   :  { %v1332_v47 = vadd.f32 %v2684_v24, %v1189_v30 }
 0x7e8   :  { %v1376_v49 = vmax.f32 %v1355_v35, 0.0 }
 0x7e9   :  { %v1367_v35 = vmax.f32 %v1332_v47, 0.0 }
 0x7ea   :  { %1404 = vmax.xlane.f32.xlu1 %v1376_v49 }
 0x7ed   :  { %v1356_v57 = vpop.f32.mrf.mxu0 }
 0x7ee   :  { %v1357_v8 = vadd.f32 %v1356_v57, %v1239_v7 }
 0x7f0   :  { %v1377_v6 = vmax.f32 %v1357_v8, 0.0 }
 0x7f2   :  { %1406 = vmax.xlane.f32.xlu0 %v1377_v6  ;;  %1392 = vmax.xlane.f32.xlu1 %v1370_v48 }
 0x7f5   :  { %v1359_v54 = vpop.f32.mrf.mxu0 }
 0x7f6   :  { %v1360_v52 = vadd.f32 %v1359_v54, %v1244_v27  ;;  %v1179_v27 = vpop.permute.xlu1 %1178 }
 0x7f7   :  { %v1327_v34 = vadd.f32 %v2680_v22, %v1179_v27 }
 0x7f8   :  { %v1378_v61 = vmax.f32 %v1360_v52, 0.0 }
 0x7f9   :  { %v1365_v62 = vmax.f32 %v1327_v34, 0.0 }
 0x7fa   :  { %1408 = vmax.xlane.f32.xlu0 %v1378_v61  ;;  %1390 = vmax.xlane.f32.xlu1 %v1369_v53 }
 0x7fd   :  { %v1361_v14 = vpop.f32.mrf.mxu0 }
 0x7fe   :  { %v1362_v15 = vadd.f32 %v1361_v14, %v1249_v60  ;;  %v1366_v60 = vmax.f32 %v1330_v20, 0.0 }
 0x800   :  { %v1379_v63 = vmax.f32 %v1362_v15, 0.0 }
 0x802   :  { %1410 = vmax.xlane.f32.xlu2 %v1379_v63  ;;  %1396 = vmax.xlane.f32.xlu0 %v1372_v46  ;;  %v2047_v46 = vld [vmem:[%s2765_s1 + $0x88] sm:$0xff]  ;;  %v2048_v63 = vld [vmem:[%s2765_s1 + $0x90] sm:$0xff] }
 0x803   :  { %1380 = vmax.xlane.f32.xlu1 %v1364_v1 }
 0x80a   :  { %1398 = vmax.xlane.f32.xlu2 %v1373_v33  ;;  %1394 = vmax.xlane.f32.xlu0 %v1371_v16 }
 0x812   :  { %1388 = vmax.xlane.f32.xlu2 %v1368_v17  ;;  %1384 = vmax.xlane.f32.xlu0 %v1366_v60 }
 0x81a   :  { %1386 = vmax.xlane.f32.xlu2 %v1367_v35  ;;  %1382 = vmax.xlane.f32.xlu0 %v1365_v62 }
 0x84d   :  { %v1401_v7 = vpop.xlane.xlu2 %1400 }
 0x855   :  { %v1403_v49 = vpop.xlane.xlu1 %1402 }
 0x856   :  { %v1425_v37 = vpack.c.bf16 %v1403_v49, %v1401_v7 }
 0x85d   :  { %v1405_v56 = vpop.xlane.xlu1 %1404 }
 0x865   :  { %v1407_v43 = vpop.xlane.xlu0 %1406  ;;  %v1393_v6 = vpop.xlane.xlu1 %1392 }
 0x866   :  { %v1426_v48 = vpack.c.bf16 %v1407_v43, %v1405_v56 }
 0x86d   :  { %v1409_v23 = vpop.xlane.xlu0 %1408  ;;  %v1391_v53 = vpop.xlane.xlu1 %1390 }
 0x875   :  { %v1411_v28 = vpop.xlane.xlu2 %1410  ;;  %v1397_v57 = vpop.xlane.xlu0 %1396 }
 0x876   :  { %v1427_v8 = vpack.c.bf16 %v1411_v28, %v1409_v23  ;;  %v1381_v14 = vpop.xlane.xlu1 %1380 }
 0x878   :  { %1460 = vmatpush.bf16.msrb.mxu1 %v1427_v8 }
 0x87c   :  { %1461 = vmatpush.bf16.msrb.mxu1 %v1426_v48  ;;  %v2053_v48 = vld [vmem:[%s2765_s1 + $0xb8] sm:$0xff] }
 0x87d   :  { %v1399_v2 = vpop.xlane.xlu2 %1398  ;;  %v1395_v22 = vpop.xlane.xlu0 %1394  ;;  %1997 = vmatmul.msk.bf16.vlgmr.msra.gmra.mxu3 %vm223_vm1, %v2053_v48 }
 0x87e   :  { %v1424_v24 = vpack.c.bf16 %v1399_v2, %v1397_v57  ;;  %v1423_v52 = vpack.c.bf16 %v1395_v22, %v1393_v6 }
 0x880   :  { %1462 = vmatpush.bf16.msrb.mxu1 %v1425_v37 }
 0x884   :  { %1463 = vmatpush.bf16.msrb.mxu1 %v1424_v24 }
 0x885   :  { %v1389_v44 = vpop.xlane.xlu2 %1388  ;;  %v1385_v54 = vpop.xlane.xlu0 %1384 }
 0x886   :  { %v1422_v61 = vpack.c.bf16 %v1391_v53, %v1389_v44 }
 0x888   :  { %1464 = vmatpush.bf16.msrb.mxu1 %v1423_v52 }
 0x88c   :  { %1465 = vmatpush.bf16.msrb.mxu1 %v1422_v61 }
 0x88d   :  { %v1387_v40 = vpop.xlane.xlu2 %1386  ;;  %v1383_v12 = vpop.xlane.xlu0 %1382 }
 0x88e   :  { %v1421_v9 = vpack.c.bf16 %v1387_v40, %v1385_v54  ;;  %v1420_v15 = vpack.c.bf16 %v1383_v12, %v1381_v14 }
 0x890   :  { %1466 = vmatpush.bf16.msrb.mxu1 %v1421_v9 }
 0x894   :  { %1467 = vmatpush.bf16.msrb.mxu1 %v1420_v15  ;;  %v1698_v15 = vld [vmem:[%s2766_s2 + $0x1a0] sm:$0x1] }
 0x897   :  { %1468 = vmatmul.bf16.vlgmr.msrb.gmra.mxu1 %v2045_v18 }
 0x8a7   :  { %1473 = vmatmul.bf16.gmra.mxu1 %v2046_v19 }
 0x8b7   :  { %1478 = vmatmul.bf16.gmra.mxu1 %v2047_v46 }
 0x8c7   :  { %1483 = vmatmul.bf16.gmra.mxu1 %v2048_v63 }
 0x914   :  { %v1469_v1 = vpop.f32.mrf.mxu1 }
 0x91c   :  { %v1471_v29 = vpop.f32.mrf.mxu1 }
 0x91d   :  { %v1472_v7 = vadd.f32 %v1471_v29, %v2488_v0 }
 0x924   :  { %v1474_v31 = vpop.f32.mrf.mxu1 }
 0x925   :  { %v1475_v43 = vadd.f32 %v1474_v31, %v2482_v32  ;;  %v2050_v32 = vld [vmem:[%s2765_s1 + $0xa0] sm:$0xff] }
 0x927   :  { %v1491_v56 = vmax.f32 %v1475_v43, 0.0 }
 0x92c   :  { %v1476_v16 = vpop.f32.mrf.mxu1 }
 0x92d   :  { %v1477_v47 = vadd.f32 %v1476_v16, %v2476_v45  ;;  %v2049_v45 = vld [vmem:[%s2765_s1 + $0x98] sm:$0xff] }
 0x934   :  { %v1479_v33 = vpop.f32.mrf.mxu1 }
 0x935   :  { %v1480_v30 = vadd.f32 %v1479_v33, %v2469_v41 }
 0x937   :  { %v1493_v49 = vmax.f32 %v1480_v30, 0.0 }
 0x93c   :  { %v1481_v3 = vpop.f32.mrf.mxu1 }
 0x93d   :  { %v1482_v60 = vadd.f32 %v1481_v3, %v2458_v25  ;;  %v1470_v25 = vadd.f32 %v1469_v1, %v2494_v50  ;;  %v1642_v1 = vpop.f32.mrf.mxu3 }
 0x93f   :  { %v1494_v62 = vmax.f32 %v1482_v60, 0.0  ;;  %v1489_v28 = vmax.f32 %v1470_v25, 0.0 }
 0x941   :  { %v1503_v23 = vpack.c.bf16 %v1494_v62, %v1493_v49 }
 0x944   :  { %v1484_v42 = vpop.f32.mrf.mxu1 }
 0x945   :  { %v1485_v20 = vadd.f32 %v1484_v42, %v2453_v4  ;;  %v1492_v4 = vmax.f32 %v1477_v47, 0.0 }
 0x947   :  { %v1495_v27 = vmax.f32 %v1485_v20, 0.0  ;;  %v1502_v41 = vpack.c.bf16 %v1492_v4, %v1491_v56  ;;  %v2055_v56 = vld [vmem:[%s2765_s1 + $0xc8] sm:$0xff] }
 0x94c   :  { %v1486_v58 = vpop.f32.mrf.mxu1 }
 0x94d   :  { %v1487_v17 = vadd.f32 %v1486_v58, %v2463_v26  ;;  %v1490_v26 = vmax.f32 %v1472_v7, 0.0 }
 0x94f   :  { %v1496_v34 = vmax.f32 %v1487_v17, 0.0  ;;  %v1501_v57 = vpack.c.bf16 %v1490_v26, %v1489_v28 }
 0x951   :  { %v1504_v35 = vpack.c.bf16 %v1496_v34, %v1495_v27 }
 0x953   :  { %1529 = vmatpush.bf16.msrb.mxu2 %v1504_v35 }
 0x957   :  { %1530 = vmatpush.bf16.msrb.mxu2 %v1503_v23 }
 0x95b   :  { %1531 = vmatpush.bf16.msrb.mxu2 %v1502_v41 }
 0x95f   :  { %1532 = vmatpush.bf16.msrb.mxu2 %v1501_v57 }
 0x962   :  { %1977 = vmatmul.msk.bf16.vlgmr.msrb.gmra.mxu2 %vm429_vm2, %v2049_v45 }
 0x972   :  { %1978 = vmatmul.msk.bf16.gmra.mxu2 %vm429_vm2, %v2050_v32 }
 0x9e5   :  { %v1534_v0 = vpop.f32.mrf.mxu2 }
 0x9e6   :  { %v1535_v24 = vadd.f32 %v1534_v0, %v2528_v5 }
 0x9e8   :  { %v1544_v61 = vmax.f32 %v1535_v24, 0.0 }
 0x9ed   :  { %v1536_v50 = vpop.f32.mrf.mxu2 }
 0x9ee   :  { %v1537_v22 = vadd.f32 %v1536_v50, %v2514_v38  ;;  %v2054_v38 = vld [vmem:[%s2765_s1 + $0xc0] sm:$0xff] }
 0x9ef   :  { %1998 = vmatmul.msk.bf16.gmra.mxu3 %vm223_vm1, %v2054_v38 }
 0x9f0   :  { %v1545_v52 = vmax.f32 %v1537_v22, 0.0 }
 0x9f2   :  { %v1552_v40 = vpack.c.bf16 %v1545_v52, %v1544_v61 }
 0x9f5   :  { %v1539_v8 = vpop.f32.mrf.mxu2 }
 0x9f6   :  { %v1540_v6 = vadd.f32 %v1539_v8, %v2509_v36  ;;  %v2051_v36 = vld [vmem:[%s2765_s1 + $0xa8] sm:$0xff] }
 0x9f8   :  { %v1546_v44 = vmax.f32 %v1540_v6, 0.0 }
 0x9fd   :  { %v1541_v2 = vpop.f32.mrf.mxu2 }
 0x9fe   :  { %v1542_v37 = vadd.f32 %v1541_v2, %v2519_v39  ;;  %v2052_v39 = vld [vmem:[%s2765_s1 + $0xb0] sm:$0xff] }
 0xa00   :  { %v1547_v54 = vmax.f32 %v1542_v37, 0.0  ;;  %v1696_v37 = vld [vmem:[%s2765_s1 + $0xd0] sm:$0x1]  ;;  %s1745_s1 = sshll.u32 %s2147_s4, 4  ;;  %s1746_s1 = int_to_ptr.vmem [resolvable:$true] %s1745_s1 }
 0xa02   :  { %v1553_v53 = vpack.c.bf16 %v1547_v54, %v1546_v44 }
 0xa04   :  { %1580 = vmatpush.bf16.msra.mxu2 %v1553_v53 }
 0xa08   :  { %1581 = vmatpush.bf16.msra.mxu2 %v1552_v40 }
 0xa0b   :  { %1987 = vmatmul.msk.bf16.vlgmr.msra.gmra.mxu2 %vm223_vm1, %v2051_v36 }
 0xa1b   :  { %1988 = vmatmul.msk.bf16.gmra.mxu2 %vm223_vm1, %v2052_v39 }
 0xa8e   :  { %v1583_v5 = vpop.f32.mrf.mxu2 }
 0xa8f   :  { %v1584_v9 = vadd.f32 %v1583_v5, %v2557_v55  ;;  %v837_v55 = vld [vmem:[%s2766_s2 + $0x1a0] sm:$0x1] }
 0xa91   :  { %1599 = vperm.xlu0 %2109, %v1584_v9  }
 0xa96   :  { %v1585_v12 = vpop.f32.mrf.mxu2 }
 0xa97   :  { %v1586_v46 = vadd.f32 %v1585_v12, %v2571_v51 }
 0xa99   :  { %1664 = vperm.xlu0 %2109, %v2587_v10  }
 0xa9e   :  { %v1588_v14 = vpop.f32.mrf.mxu2 }
 0xa9f   :  { %v1589_v18 = vadd.f32 %v1588_v14, %v2564_v59  ;;  %v1644_v59 = vpop.f32.mrf.mxu3 }
 0xaa1   :  { %1609 = vperm.xlu2 %2089, %v1589_v18   ;;  %1701 = vperm.xlu0 %2109, %v1698_v15  }
 0xaa6   :  { %v1590_v19 = vpop.f32.mrf.mxu2 }
 0xaa7   :  { %v1591_v63 = vadd.f32 %v1590_v19, %v2576_v21  ;;  %v1647_v51 = vpop.f32.mrf.mxu3 }
 0xaa9   :  { %1614 = vperm.xlu1 %2108, %v1591_v63   ;;  %1604 = vperm.xlu2 %2089, %v1586_v46  }
 0xaaf   :  { %v1649_v58 = vpop.f32.mrf.mxu3 }
 0xab1   :  { %1669 = vperm.xlu1 %2108, %v2595_v11   ;;  %840 = vperm.xlu2 %2089, %v837_v55  }
 0xafb   :  { %v1610_v10 = vpop.permute.xlu2 %1609 }
 0xafc   :  { %v1648_v20 = vadd.f32 %v1647_v51, %v1610_v10 }
 0xafe   :  { %v1654_v27 = vmax.f32 %v1648_v20, 0.0 }
 0xb03   :  { %v1605_v29 = vpop.permute.xlu2 %1604  ;;  %v1600_v42 = vpop.permute.xlu0 %1599 }
 0xb04   :  { %v1645_v17 = vadd.f32 %v1644_v59, %v1605_v29  ;;  %v1643_v11 = vadd.f32 %v1642_v1, %v1600_v42 }
 0xb06   :  { %v1653_v62 = vmax.f32 %v1645_v17, 0.0  ;;  %v1652_v35 = vmax.f32 %v1643_v11, 0.0 }
 0xb08   :  { %v1658_v4 = vpack.c.bf16 %v1653_v62, %v1652_v35 }
 0xb0b   :  { %v841_v31 = vpop.permute.xlu2 %840  ;;  %v1665_v32 = vpop.permute.xlu0 %1664 }
 0xb0c   :  { %v856_v16 = vadd.f32 %v2666_v13, %v841_v31 }
 0xb0e   :  { %v1881_v33 = vmul.f32 -1.442695, %v856_v16 }
 0xb10   :  { %2110 = vpow2.f32 %v1881_v33 }
 0xb13   :  { %v1702_v24 = vpop.permute.xlu0 %1701 }
 0xb16   :  { %v2111_v21 = vpop.eup %2110 }
 0xb17   :  { %v862_v3 = vadd.f32 1.0, %v2111_v21 }
 0xb19   :  { %2112 = vrcp.f32 %v862_v3  ;;  %v874_v7 = vand.u32 2147483648, %v862_v3  ;;  %v872_v25 = vand.u32 2147483647, %v862_v3  ;;  %vm868_vm4 = vweird.f32 %v862_v3 }
 0xb1b   :  { %v1615_v60 = vpop.permute.xlu1 %1614  ;;  %v875_v41 = vor.u32 1.1754944e-38, %v874_v7  ;;  %vm873_vm6 = vcmp.eq.f32.partialorder %v872_v25, 8.507059e+37 }
 0xb1c   :  { %v1650_v30 = vadd.f32 %v1649_v58, %v1615_v60 }
 0xb1e   :  { %v1655_v34 = vmax.f32 %v1650_v30, 0.0 }
 0xb1f   :  { %v2113_v47 = vpop.eup %2112 }
 0xb20   :  { %v864_v43 = vmul.f32 %v2113_v47, %v862_v3  ;;  %v1659_v13 = vpack.c.bf16 %v1655_v34, %v1654_v27  ;;  %vm869_vm3 = vweird.f32 %v2113_v47 }
 0xb21   :  { %vm870_vm5 = vmor %vm868_vm4, %vm869_vm3 }
 0xb22   :  { %v865_v49 = vsub.f32 1.0, %v864_v43  ;;  %1686 = vmatpush.bf16.msra.mxu1 %v1659_v13 }
 0xb23   :  { %v1670_v50 = vpop.permute.xlu1 %1669 }
 0xb24   :  { %v866_v23 = vmul.f32 %v2113_v47, %v865_v49 }
 0xb26   :  { %1687 = vmatpush.bf16.msra.mxu1 %v1658_v4  ;;  %v867_v26 = vadd.f32 %v2113_v47, %v866_v23 }
 0xb28   :  { %v871_v28 = vsel %vm870_vm5, %v2113_v47, %v867_v26 }
 0xb29   :  { %2003 = vmatmul.msk.bf16.vlgmr.msra.gmra.mxu1 %vm223_vm1, %v2055_v56  ;;  %v876_v57 = vsel %vm873_vm6, %v875_v41, %v871_v28 }
 0xb2a   :  { %878 = vst [vmem:[#allocation2] sm:$0x1] %v876_v57 }
 0xba6   :  { %v1689_v45 = vpop.f32.mrf.mxu1 }
 0xba7   :  { %v1690_v0 = vadd.f32 %v1689_v45, %v1665_v32 }
 0xba9   :  { %v1694_v6 = vmax.f32 %v1690_v0, 0.0 }
 0xbae   :  { %v1691_v8 = vpop.f32.mrf.mxu1 }
 0xbaf   :  { %v1692_v48 = vadd.f32 %v1691_v8, %v1670_v50 }
 0xbb1   :  { %v1695_v2 = vmax.f32 %v1692_v48, 0.0 }
 0xbb3   :  { %v1697_v22 = vpack.c.bf16 %v1695_v2, %v1694_v6 }
 0xbb5   :  { %1714 = vmatpush.bf16.msrb.mxu2 %v1697_v22 }
 0xbb8   :  { %2004 = vmatmul.msk.bf16.vlgmr.msrb.gmra.mxu2 %vm115_vm0, %v1696_v37 }
 0xc3b   :  { %v1716_v44 = vpop.f32.mrf.mxu2 }
 0xc3c   :  { %v1717_v54 = vadd.f32 %v1716_v44, %v1702_v24 }
 0xc3e   :  { %v2005_v52 = vmul.f32 -1.442695, %v1717_v54 }
 0xc40   :  { %2114 = vpow2.f32 %v2005_v52 }
 0xc43   :  { %v1718_v53 = vpop.f32.mrf.mxu2 }
 0xc46   :  { %v2115_v61 = vpop.eup %2114 }
 0xc47   :  { %v1723_v40 = vadd.f32 1.0, %v2115_v61 }
 0xc49   :  { %2116 = vrcp.f32 %v1723_v40  ;;  %v1735_v5 = vand.u32 2147483648, %v1723_v40  ;;  %v1733_v12 = vand.u32 2147483647, %v1723_v40  ;;  %vm1729_vm8 = vweird.f32 %v1723_v40 }
 0xc4b   :  { %v1736_v15 = vor.u32 1.1754944e-38, %v1735_v5  ;;  %vm1734_vm10 = vcmp.eq.f32.partialorder %v1733_v12, 8.507059e+37 }
 0xc4f   :  { %v2117_v36 = vpop.eup %2116 }
 0xc50   :  { %v1725_v38 = vmul.f32 %v2117_v36, %v1723_v40  ;;  %vm1730_vm7 = vweird.f32 %v2117_v36 }
 0xc51   :  { %vm1731_vm9 = vmor %vm1729_vm8, %vm1730_vm7 }
 0xc52   :  { %v1726_v39 = vsub.f32 1.0, %v1725_v38 }
 0xc54   :  { %v1727_v9 = vmul.f32 %v2117_v36, %v1726_v39 }
 0xc56   :  { %v1728_v14 = vadd.f32 %v2117_v36, %v1727_v9 }
 0xc58   :  { %v1732_v18 = vsel %vm1731_vm9, %v2117_v36, %v1728_v14 }
 0xc59   :  { %v1737_v19 = vsel %vm1734_vm10, %v1736_v15, %v1732_v18 }
 0xc5a   :  { %1740 = vst [vmem:[#allocation2 + $0x1] sm:$0x1] %v1737_v19 }
 0xc5b   :  { %1753 = dma.vmem_to_hbm [thread:$0]  %s1746_s1, 32, %s1748_s7, [#allocation3], %s2148_s8, %s2148_s8, %s2149_s9  }
 0xc5c   :  { %2142 = dma.done.wait [#allocation3], 32  }
 0xc5d   :  { %2143 = vsyncadd [#allocation3], 4294967264 }
 0xc5e   :  { %1758 = vsyncpa [#allocation3], 1 }

</bundles_post_ra>
